<compile_context>
chip_gen: v6e
topology: v6e:2x2x1
jax: 0.10.0
libtpu: 0.0.40
codegen_flags: <defaults>
</compile_context>

<pallas_src>
import math

import jax
import jax.numpy as jnp
from jax import lax
from jax.experimental import pallas as pl
from jax.experimental.pallas import tpu as pltpu

_LANE = 128


def _round_up(x, m):
    return ((x + m - 1) // m) * m


def _tpu_vmem_capacity():
    try:
        info = pltpu.get_tpu_info()
        cap = int(getattr(info, "vmem_capacity_bytes", 0) or 0)
        if cap > 0:
            return cap
    except Exception:
        pass
    return 64 << 20  # conservative default (v7x per-TC VMEM)


def _budgets():
    """(per-chunk byte budget, vmem_limit clamp) — generation aware."""
    cap = _tpu_vmem_capacity()
    if cap >= (96 << 20):            # v5e / v6e: 128 MiB physical VMEM
        return 12 << 20, 96 << 20
    return 4 << 20, 40 << 20         # v7x: 64 MiB physical VMEM


def _choose_time_tile(T, batch, row_bytes, budget_bytes, cap=512):
    """Largest divisor of T whose (t_tile*batch)-row chunk fits the VMEM budget.

    Batch is pre-padded to a sublane multiple, so every divisor is alignment-legal;
    t_tile=1 is always reachable, so this never falls back to an over-budget full-T block.
    """
    max_t = max(1, min(cap, budget_bytes // max(batch * row_bytes, 1)))
    for d in range(min(T, max_t), 0, -1):
        if T % d == 0:
            return d
    return 1


def _vmem_limit(est_bytes, clamp):
    return int(min(max(est_bytes + (8 << 20), 16 << 20), clamp))


# ---------------------------------------------------------------------------
# Kernels
# ---------------------------------------------------------------------------
def _gru_chunk(x_ref, wi_ref, wh_ref, bi_ref, bhn_ref, gi_scr, h_scr, hseq_ref):
    """Run one time chunk of the GRU recurrence.

    x_ref   : (t_tile*Bp, In)        input rows (row = t*Bp + b)
    wi_ref  : (In, 3*Hp)  bf16       input->hidden weights, gates [r|z|n]
    wh_ref  : (Hp, 3*Hp)  bf16       hidden->hidden weights, gates [r|z|n]
    bi_ref  : (1, 3*Hp)   f32        b_ih with b_hr/b_hz folded in
    bhn_ref : (1, Hp)     f32        b_hn (must stay inside r * (gh_n + b_hn))
    gi_scr  : (t_tile*Bp, 3*Hp) f32  scratch for hoisted input projections
    h_scr   : (Bp, Hp)    f32        hidden state carried across grid steps
    hseq_ref: (t_tile*Bp, Hp) or None  hidden-sequence output (intermediate layers only)
    """
    b_rows, hp = h_scr.shape
    rows, in_dim = x_ref.shape
    t_tile = rows // b_rows

    @pl.when(pl.program_id(0) == 0)
    def _():
        h_scr[...] = jnp.zeros_like(h_scr)

    # --- hoisted input-side gate projections for the whole chunk -------------
    if in_dim == 1:
        # rank-1 input: broadcast multiply, no MXU involved.
        gi = x_ref[...].astype(jnp.float32) * wi_ref[...].astype(jnp.float32)
    else:
        gi = jnp.dot(x_ref[...].astype(jnp.bfloat16), wi_ref[...],
                     preferred_element_type=jnp.float32)
    gi_scr[...] = gi + bi_ref[...]

    # hoisted bias broadcast (JAX does not CSE broadcast_in_dim inside loops).
    bhn = jnp.broadcast_to(bhn_ref[...], (b_rows, hp))

    def step(i, h_prev):
        row = pl.multiple_of(i * b_rows, 8)
        # single fused (Hp, 3Hp) hidden-side matmul per step
        gh = jnp.dot(h_prev.astype(jnp.bfloat16), wh_ref[...],
                     preferred_element_type=jnp.float32)
        gi_t = gi_scr[pl.ds(row, b_rows), :]
        r = jax.nn.sigmoid(gi_t[:, :hp] + gh[:, :hp])
        z = jax.nn.sigmoid(gi_t[:, hp:2 * hp] + gh[:, hp:2 * hp])
        n = jnp.tanh(gi_t[:, 2 * hp:] + r * (gh[:, 2 * hp:] + bhn))
        h_new = (1.0 - z) * n + z * h_prev
        if hseq_ref is not None:
            hseq_ref[pl.ds(row, b_rows), :] = h_new.astype(hseq_ref.dtype)
        return h_new

    # register-carried hidden state: VMEM touched only at chunk boundaries.
    unroll = t_tile if t_tile <= 8 else 8
    h_final = lax.fori_loop(0, t_tile, step, h_scr[...], unroll=unroll)
    h_scr[...] = h_final


def _gru_seq_kernel(x_ref, wi_ref, wh_ref, bi_ref, bhn_ref, hseq_ref, gi_scr, h_scr):
    _gru_chunk(x_ref, wi_ref, wh_ref, bi_ref, bhn_ref, gi_scr, h_scr, hseq_ref)


def _gru_last_fc_kernel(x_ref, wi_ref, wh_ref, bi_ref, bhn_ref, fcw_ref, fcb_ref,
                        out_ref, gi_scr, h_scr):
    _gru_chunk(x_ref, wi_ref, wh_ref, bi_ref, bhn_ref, gi_scr, h_scr, None)

    @pl.when(pl.program_id(0) == pl.num_programs(0) - 1)
    def _():
        y = jnp.dot(h_scr[...].astype(jnp.bfloat16), fcw_ref[...],
                    preferred_element_type=jnp.float32) + fcb_ref[...]
        out_ref[...] = jax.nn.sigmoid(y).astype(out_ref.dtype)


# ---------------------------------------------------------------------------
# pallas_call wrappers
# ---------------------------------------------------------------------------
def _gru_seq_layer(x2d, wi, wh, bi, bhn, batch):
    """Intermediate GRU layer: emits the full hidden sequence (T*Bp, Hp) in bf16."""
    tb, in_dim = x2d.shape
    T = tb // batch
    hp = wh.shape[0]
    g = 3 * hp
    x_item = x2d.dtype.itemsize
    budget, clamp = _budgets()
    row_bytes = 2 * in_dim * x_item + 2 * hp * 2 + g * 4
    t_tile = _choose_time_tile(T, batch, row_bytes, budget)
    rows = t_tile * batch
    n_t = T // t_tile

    est = (2 * (wi.size * wi.dtype.itemsize + wh.size * wh.dtype.itemsize
                + (bi.size + bhn.size) * 4)
           + 2 * rows * in_dim * x_item          # x double-buffer
           + 2 * rows * hp * 2                   # hseq double-buffer (bf16)
           + rows * g * 4 + batch * hp * 4)      # scratch

    return pl.pallas_call(
        _gru_seq_kernel,
        out_shape=jax.ShapeDtypeStruct((tb, hp), jnp.bfloat16),
        grid_spec=pltpu.PrefetchScalarGridSpec(
            num_scalar_prefetch=0,
            grid=(n_t,),
            in_specs=[
                pl.BlockSpec((rows, in_dim), lambda t: (t, 0)),
                pl.BlockSpec((in_dim, g), lambda t: (0, 0)),
                pl.BlockSpec((hp, g), lambda t: (0, 0)),
                pl.BlockSpec((1, g), lambda t: (0, 0)),
                pl.BlockSpec((1, hp), lambda t: (0, 0)),
            ],
            out_specs=pl.BlockSpec((rows, hp), lambda t: (t, 0)),
            scratch_shapes=[
                pltpu.VMEM((rows, g), jnp.float32),
                pltpu.VMEM((batch, hp), jnp.float32),
            ],
        ),
        compiler_params=pltpu.CompilerParams(
            dimension_semantics=("arbitrary",),
            vmem_limit_bytes=_vmem_limit(est, clamp),
        ),
    )(x2d, wi, wh, bi, bhn)


def _gru_last_fc_layer(x2d, wi, wh, bi, bhn, fc_w, fc_b, batch):
    """Last GRU layer fused with FC + sigmoid: emits only (Bp, O)."""
    tb, in_dim = x2d.shape
    T = tb // batch
    hp = wh.shape[0]
    g = 3 * hp
    o = fc_w.shape[1]
    x_item = x2d.dtype.itemsize
    budget, clamp = _budgets()
    row_bytes = 2 * in_dim * x_item + g * 4
    t_tile = _choose_time_tile(T, batch, row_bytes, budget)
    rows = t_tile * batch
    n_t = T // t_tile

    est = (2 * (wi.size * wi.dtype.itemsize + wh.size * wh.dtype.itemsize
                + (bi.size + bhn.size) * 4
                + fc_w.size * fc_w.dtype.itemsize + fc_b.size * 4)
           + 2 * rows * in_dim * x_item
           + rows * g * 4 + batch * hp * 4 + batch * o * 4)

    return pl.pallas_call(
        _gru_last_fc_kernel,
        out_shape=jax.ShapeDtypeStruct((batch, o), jnp.float32),
        grid_spec=pltpu.PrefetchScalarGridSpec(
            num_scalar_prefetch=0,
            grid=(n_t,),
            in_specs=[
                pl.BlockSpec((rows, in_dim), lambda t: (t, 0)),
                pl.BlockSpec((in_dim, g), lambda t: (0, 0)),
                pl.BlockSpec((hp, g), lambda t: (0, 0)),
                pl.BlockSpec((1, g), lambda t: (0, 0)),
                pl.BlockSpec((1, hp), lambda t: (0, 0)),
                pl.BlockSpec((hp, o), lambda t: (0, 0)),
                pl.BlockSpec((1, o), lambda t: (0, 0)),
            ],
            out_specs=pl.BlockSpec((batch, o), lambda t: (0, 0)),
            scratch_shapes=[
                pltpu.VMEM((rows, g), jnp.float32),
                pltpu.VMEM((batch, hp), jnp.float32),
            ],
        ),
        compiler_params=pltpu.CompilerParams(
            dimension_semantics=("arbitrary",),
            vmem_limit_bytes=_vmem_limit(est, clamp),
        ),
    )(x2d, wi, wh, bi, bhn, fc_w, fc_b)


# ---------------------------------------------------------------------------
# Model
# ---------------------------------------------------------------------------
class ModelPallas:
    """Pallas TPU port of Time-LLM/models/GRU.py::Model (inference semantics)."""

    def __init__(self, hidden_size, num_layers, output_size, input_size=1, key=None):
        if key is None:
            key = jax.random.PRNGKey(0)
        self.hidden_size = hidden_size
        self.num_layers = num_layers
        self.output_size = output_size
        self.input_size = input_size
        self.h_pad = max(_LANE, _round_up(hidden_size, _LANE))

        k = 1.0 / math.sqrt(hidden_size)
        self.layers = []
        for layer in range(num_layers):
            in_l = input_size if layer == 0 else hidden_size
            in_pad = input_size if layer == 0 else self.h_pad
            key, k1, k2, k3, k4 = jax.random.split(key, 5)
            w_ih = jax.random.uniform(k1, (3 * hidden_size, in_l), jnp.float32, -k, k)
            w_hh = jax.random.uniform(k2, (3 * hidden_size, hidden_size), jnp.float32, -k, k)
            b_ih = jax.random.uniform(k3, (3 * hidden_size,), jnp.float32, -k, k)
            b_hh = jax.random.uniform(k4, (3 * hidden_size,), jnp.float32, -k, k)
            self.layers.append(self._repack(w_ih, w_hh, b_ih, b_hh, in_l, in_pad))

        key, k5, k6 = jax.random.split(key, 3)
        fc_w = jax.random.uniform(k5, (output_size, hidden_size), jnp.float32, -k, k)
        fc_b = jax.random.uniform(k6, (output_size,), jnp.float32, -k, k)
        self.fc_w = jnp.pad(fc_w.T, ((0, self.h_pad - hidden_size), (0, 0))
                            ).astype(jnp.bfloat16)                       # (Hp, O) bf16
        self.fc_b = fc_b.reshape(1, output_size).astype(jnp.float32)

    def _repack(self, w_ih, w_hh, b_ih, b_hh, in_dim, in_pad):
        """PyTorch (3H, In)/(3H, H)/(3H,) -> lane-padded slabs; gate order [r, z, n]."""
        H, Hp = self.hidden_size, self.h_pad
        wi_g = jnp.transpose(w_ih.reshape(3, H, in_dim), (0, 2, 1))  # (3, In, H)
        wh_g = jnp.transpose(w_hh.reshape(3, H, H), (0, 2, 1))       # (3, H,  H)
        bi_g = b_ih.reshape(3, H)
        bh_g = b_hh.reshape(3, H)
        bi_fold = bi_g + bh_g.at[2].set(0.0)   # fold b_hr/b_hz; b_hn must stay separate

        def pad2(a, rs, cs):
            return jnp.pad(a, ((0, rs - a.shape[0]), (0, cs - a.shape[1])))

        def pad1(a):
            return jnp.pad(a, (0, Hp - H))

        wi = jnp.concatenate([pad2(wi_g[g], in_pad, Hp) for g in range(3)], axis=1)
        wh = jnp.concatenate([pad2(wh_g[g], Hp, Hp) for g in range(3)], axis=1)
        bi = jnp.concatenate([pad1(bi_fold[g]) for g in range(3)]).reshape(1, 3 * Hp)
        bhn = pad1(bh_g[2]).reshape(1, Hp)
        return (wi.astype(jnp.bfloat16), wh.astype(jnp.bfloat16),
                bi.astype(jnp.float32), bhn.astype(jnp.float32))

    def __call__(self, x):
        # x: (B, T) float32 — mirrors the PyTorch forward's x.unsqueeze(-1)
        x = jnp.asarray(x, jnp.float32)
        B, T = x.shape
        # Pad batch to a sublane multiple so per-step gi loads / hseq stores are
        # unmasked & 8-aligned (16 rows covers the bf16 hidden-sequence tile).
        b_pad = _round_up(max(B, 1), 16 if self.num_layers > 1 else 8)
        xp = jnp.pad(x, ((0, b_pad - B), (0, 0)))
        seq = jnp.transpose(xp, (1, 0)).reshape(T * b_pad, 1)  # flat time-major, row = t*Bp + b
        out = None
        for li, (wi, wh, bi, bhn) in enumerate(self.layers):
            if li < self.num_layers - 1:
                seq = _gru_seq_layer(seq, wi, wh, bi, bhn, b_pad)
            else:
                out = _gru_last_fc_layer(seq, wi, wh, bi, bhn, self.fc_w, self.fc_b, b_pad)
        return jnp.squeeze(out[:B])   # drop pad rows, mirrors torch .squeeze()


# ---------------------------------------------------------------------------
# Pure-JAX reference mirroring the kernel numerics (bf16 MXU operands, f32 accumulate)
# ---------------------------------------------------------------------------
def reference_forward(model: ModelPallas, x):
    x = jnp.asarray(x, jnp.float32)
    B, T = x.shape
    seq = jnp.transpose(x, (1, 0)).reshape(T * B, 1)
    out = None
    for li, (wi, wh, bi, bhn) in enumerate(model.layers):
        in_dim = wi.shape[0]
        hp = wh.shape[0]
        if in_dim == 1:
            gi = seq.astype(jnp.float32) * wi.astype(jnp.float32) + bi
        else:
            gi = jnp.dot(seq.astype(jnp.bfloat16), wi,
                         preferred_element_type=jnp.float32) + bi
        gi = gi.reshape(T, B, 3 * hp)

        def step(h, gi_t, wh=wh, bhn=bhn, hp=hp):
            gh = jnp.dot(h.astype(jnp.bfloat16), wh, preferred_element_type=jnp.float32)
            r = jax.nn.sigmoid(gi_t[:, :hp] + gh[:, :hp])
            z = jax.nn.sigmoid(gi_t[:, hp:2 * hp] + gh[:, hp:2 * hp])
            n = jnp.tanh(gi_t[:, 2 * hp:] + r * (gh[:, 2 * hp:] + bhn))
            h_new = (1.0 - z) * n + z * h
            return h_new, h_new

        h_last, hs = lax.scan(step, jnp.zeros((B, hp), jnp.float32), gi)
        if li < model.num_layers - 1:
            seq = hs.reshape(T * B, hp).astype(jnp.bfloat16)
        else:
            out = jax.nn.sigmoid(
                jnp.dot(h_last.astype(jnp.bfloat16), model.fc_w,
                        preferred_element_type=jnp.float32) + model.fc_b)
    return jnp.squeeze(out)


if __name__ == "__main__":
    batch, seq_len = 2, 8
    hidden_size, num_layers, output_size = 32, 2, 1

    key = jax.random.PRNGKey(0)
    kx, kp = jax.random.split(key)
    x = jax.random.normal(kx, (batch, seq_len), jnp.float32)

    model = ModelPallas(hidden_size, num_layers, output_size, input_size=1, key=kp)

    out = jax.block_until_ready(model(x))
    ref = jax.block_until_ready(reference_forward(model, x))

    assert out.shape == ref.shape == (batch,), (out.shape, ref.shape)
    assert jnp.allclose(out, ref, atol=1e-2, rtol=1e-2), (out, ref)

    print("KERNEL_OK")
</pallas_src>

<mosaic_0001>
module attributes {stable_mosaic.version = 11 : i64} {
  func.func @_gru_seq_kernel(%arg0: i32, %arg1: memref<128x1xf32, #tpu.memory_space<vmem>>, %arg2: memref<1x384xbf16, #tpu.memory_space<vmem>>, %arg3: memref<128x384xbf16, #tpu.memory_space<vmem>>, %arg4: memref<1x384xf32, #tpu.memory_space<vmem>>, %arg5: memref<1x128xf32, #tpu.memory_space<vmem>>, %arg6: memref<128x128xbf16, #tpu.memory_space<vmem>>, %arg7: memref<128x384xf32, #tpu.memory_space<vmem>>, %arg8: memref<16x128xf32, #tpu.memory_space<vmem>>) attributes {dimension_semantics = [#tpu.dimension_semantics<arbitrary>], iteration_bounds = array<i64: 1>, scalar_prefetch = 0 : i64, scratch_operands = 2 : i64, tpu.core_type = #tpu.core_type<tc>, window_params = [{transform_indices = @transform_0, window_bounds = array<i64: 128, 1>}, {pipeline_mode = #tpu.pipeline_mode<synchronous>, transform_indices = @transform_1, window_bounds = array<i64: 1, 384>}, {pipeline_mode = #tpu.pipeline_mode<synchronous>, transform_indices = @transform_2, window_bounds = array<i64: 128, 384>}, {pipeline_mode = #tpu.pipeline_mode<synchronous>, transform_indices = @transform_3, window_bounds = array<i64: 1, 384>}, {pipeline_mode = #tpu.pipeline_mode<synchronous>, transform_indices = @transform_4, window_bounds = array<i64: 1, 128>}, {transform_indices = @transform_5, window_bounds = array<i64: 128, 128>}]} {
    %c0_i32 = arith.constant 0 : i32
    %0 = arith.cmpi eq, %arg0, %c0_i32 : i32
    %1 = arith.extui %0 : i1 to i32
    %c0_i32_0 = arith.constant 0 : i32
    %2 = arith.cmpi ne, %1, %c0_i32_0 : i32
    scf.if %2 {
      %cst_85 = arith.constant 0.000000e+00 : f32
      %314 = vector.broadcast %cst_85 : f32 to vector<16x128xf32>
      %c0_86 = arith.constant 0 : index
      %c0_87 = arith.constant 0 : index
      %315 = vector.load %arg8[%c0_86, %c0_87] : memref<16x128xf32, #tpu.memory_space<vmem>>, vector<16x128xf32>
      tpu.vector_store %arg8[%c0_86, %c0_87], %314 {strides = array<i32>} : memref<16x128xf32, #tpu.memory_space<vmem>>, vector<16x128xf32>,
    } else {
    }
    %c0 = arith.constant 0 : index
    %c0_1 = arith.constant 0 : index
    %3 = vector.load %arg1[%c0, %c0_1] : memref<128x1xf32, #tpu.memory_space<vmem>>, vector<128x1xf32>
    %c0_2 = arith.constant 0 : index
    %c0_3 = arith.constant 0 : index
    %4 = vector.load %arg2[%c0_2, %c0_3] : memref<1x384xbf16, #tpu.memory_space<vmem>>, vector<1x384xbf16>
    %5 = arith.extf %4 : vector<1x384xbf16> to vector<1x384xf32>
    %6 = vector.broadcast %3 : vector<128x1xf32> to vector<128x384xf32>
    %7 = vector.broadcast %5 : vector<1x384xf32> to vector<128x384xf32>
    %8 = arith.mulf %6, %7 : vector<128x384xf32>
    %c0_4 = arith.constant 0 : index
    %c0_5 = arith.constant 0 : index
    %9 = vector.load %arg4[%c0_4, %c0_5] : memref<1x384xf32, #tpu.memory_space<vmem>>, vector<1x384xf32>
    %10 = vector.broadcast %9 : vector<1x384xf32> to vector<128x384xf32>
    %11 = arith.addf %8, %10 : vector<128x384xf32>
    %c0_6 = arith.constant 0 : index
    %c0_7 = arith.constant 0 : index
    %12 = vector.load %arg7[%c0_6, %c0_7] : memref<128x384xf32, #tpu.memory_space<vmem>>, vector<128x384xf32>
    tpu.vector_store %arg7[%c0_6, %c0_7], %11 {strides = array<i32>} : memref<128x384xf32, #tpu.memory_space<vmem>>, vector<128x384xf32>,
    %c0_8 = arith.constant 0 : index
    %c0_9 = arith.constant 0 : index
    %13 = vector.load %arg5[%c0_8, %c0_9] : memref<1x128xf32, #tpu.memory_space<vmem>>, vector<1x128xf32>
    %14 = vector.shape_cast %13 : vector<1x128xf32> to vector<1x128xf32>
    %15 = vector.broadcast %14 : vector<1x128xf32> to vector<16x128xf32>
    %c0_10 = arith.constant 0 : index
    %c0_11 = arith.constant 0 : index
    %16 = vector.load %arg8[%c0_10, %c0_11] : memref<16x128xf32, #tpu.memory_space<vmem>>, vector<16x128xf32>
    %c0_i32_12 = arith.constant 0 : i32
    %c16_i32 = arith.constant 16 : i32
    %17 = arith.muli %c0_i32_12, %c16_i32 : i32
    %18 = tpu.assume_multiple %17, 8 : i32
    %19 = arith.truncf %16 : vector<16x128xf32> to vector<16x128xbf16>
    %c0_13 = arith.constant 0 : index
    %c0_14 = arith.constant 0 : index
    %20 = vector.load %arg3[%c0_13, %c0_14] : memref<128x384xbf16, #tpu.memory_space<vmem>>, vector<128x384xbf16>
    %cst = arith.constant dense<0.000000e+00> : vector<16x384xf32>
    %21 = tpu.matmul %19, %20, %cst {dimension_numbers = #tpu.dot_dimension_numbers<[1], [0], [0], [1], [0, 0, 1, 1], [], []>} : vector<16x128xbf16>, vector<128x384xbf16>, vector<16x384xf32> -> vector<16x384xf32>
    %22 = arith.index_cast %18 : i32 to index
    %c0_15 = arith.constant 0 : index
    %23 = vector.load %arg7[%22, %c0_15] : memref<128x384xf32, #tpu.memory_space<vmem>>, vector<16x384xf32>
    %24 = vector.extract_strided_slice %23 {offsets = [0, 0], sizes = [16, 128], strides = [1, 1]} : vector<16x384xf32> to vector<16x128xf32>
    %25 = vector.extract_strided_slice %21 {offsets = [0, 0], sizes = [16, 128], strides = [1, 1]} : vector<16x384xf32> to vector<16x128xf32>
    %26 = arith.addf %24, %25 : vector<16x128xf32>
    %27 = arith.negf %26 : vector<16x128xf32>
    %28 = math.exp %27 : vector<16x128xf32>
    %cst_16 = arith.constant 1.000000e+00 : f32
    %29 = vector.broadcast %cst_16 : f32 to vector<16x128xf32>
    %30 = arith.addf %29, %28 : vector<16x128xf32>
    %31 = arith.divf %29, %30 : vector<16x128xf32>
    %32 = vector.extract_strided_slice %23 {offsets = [0, 128], sizes = [16, 128], strides = [1, 1]} : vector<16x384xf32> to vector<16x128xf32>
    %33 = vector.extract_strided_slice %21 {offsets = [0, 128], sizes = [16, 128], strides = [1, 1]} : vector<16x384xf32> to vector<16x128xf32>
    %34 = arith.addf %32, %33 : vector<16x128xf32>
    %35 = arith.negf %34 : vector<16x128xf32>
    %36 = math.exp %35 : vector<16x128xf32>
    %cst_17 = arith.constant 1.000000e+00 : f32
    %37 = vector.broadcast %cst_17 : f32 to vector<16x128xf32>
    %38 = arith.addf %37, %36 : vector<16x128xf32>
    %39 = arith.divf %37, %38 : vector<16x128xf32>
    %40 = vector.extract_strided_slice %23 {offsets = [0, 256], sizes = [16, 128], strides = [1, 1]} : vector<16x384xf32> to vector<16x128xf32>
    %41 = vector.extract_strided_slice %21 {offsets = [0, 256], sizes = [16, 128], strides = [1, 1]} : vector<16x384xf32> to vector<16x128xf32>
    %42 = arith.addf %41, %15 : vector<16x128xf32>
    %43 = arith.mulf %31, %42 : vector<16x128xf32>
    %44 = arith.addf %40, %43 : vector<16x128xf32>
    %45 = math.tanh %44 : vector<16x128xf32>
    %cst_18 = arith.constant 1.000000e+00 : f32
    %46 = vector.broadcast %cst_18 : f32 to vector<16x128xf32>
    %47 = arith.subf %46, %39 : vector<16x128xf32>
    %48 = arith.mulf %47, %45 : vector<16x128xf32>
    %49 = arith.mulf %39, %16 : vector<16x128xf32>
    %50 = arith.addf %48, %49 : vector<16x128xf32>
    %51 = arith.truncf %50 : vector<16x128xf32> to vector<16x128xbf16>
    %52 = arith.index_cast %18 : i32 to index
    %c0_19 = arith.constant 0 : index
    %53 = vector.load %arg6[%52, %c0_19] : memref<128x128xbf16, #tpu.memory_space<vmem>>, vector<16x128xbf16>
    tpu.vector_store %arg6[%52, %c0_19], %51 {strides = array<i32>} : memref<128x128xbf16, #tpu.memory_space<vmem>>, vector<16x128xbf16>,
    %c1_i32 = arith.constant 1 : i32
    %c16_i32_20 = arith.constant 16 : i32
    %54 = arith.muli %c1_i32, %c16_i32_20 : i32
    %55 = tpu.assume_multiple %54, 8 : i32
    %56 = arith.truncf %50 : vector<16x128xf32> to vector<16x128xbf16>
    %c0_21 = arith.constant 0 : index
    %c0_22 = arith.constant 0 : index
    %57 = vector.load %arg3[%c0_21, %c0_22] : memref<128x384xbf16, #tpu.memory_space<vmem>>, vector<128x384xbf16>
    %cst_23 = arith.constant dense<0.000000e+00> : vector<16x384xf32>
    %58 = tpu.matmul %56, %57, %cst_23 {dimension_numbers = #tpu.dot_dimension_numbers<[1], [0], [0], [1], [0, 0, 1, 1], [], []>} : vector<16x128xbf16>, vector<128x384xbf16>, vector<16x384xf32> -> vector<16x384xf32>
    %59 = arith.index_cast %55 : i32 to index
    %c0_24 = arith.constant 0 : index
    %60 = vector.load %arg7[%59, %c0_24] : memref<128x384xf32, #tpu.memory_space<vmem>>, vector<16x384xf32>
    %61 = vector.extract_strided_slice %60 {offsets = [0, 0], sizes = [16, 128], strides = [1, 1]} : vector<16x384xf32> to vector<16x128xf32>
    %62 = vector.extract_strided_slice %58 {offsets = [0, 0], sizes = [16, 128], strides = [1, 1]} : vector<16x384xf32> to vector<16x128xf32>
    %63 = arith.addf %61, %62 : vector<16x128xf32>
    %64 = arith.negf %63 : vector<16x128xf32>
    %65 = math.exp %64 : vector<16x128xf32>
    %cst_25 = arith.constant 1.000000e+00 : f32
    %66 = vector.broadcast %cst_25 : f32 to vector<16x128xf32>
    %67 = arith.addf %66, %65 : vector<16x128xf32>
    %68 = arith.divf %66, %67 : vector<16x128xf32>
    %69 = vector.extract_strided_slice %60 {offsets = [0, 128], sizes = [16, 128], strides = [1, 1]} : vector<16x384xf32> to vector<16x128xf32>
    %70 = vector.extract_strided_slice %58 {offsets = [0, 128], sizes = [16, 128], strides = [1, 1]} : vector<16x384xf32> to vector<16x128xf32>
    %71 = arith.addf %69, %70 : vector<16x128xf32>
    %72 = arith.negf %71 : vector<16x128xf32>
    %73 = math.exp %72 : vector<16x128xf32>
    %cst_26 = arith.constant 1.000000e+00 : f32
    %74 = vector.broadcast %cst_26 : f32 to vector<16x128xf32>
    %75 = arith.addf %74, %73 : vector<16x128xf32>
    %76 = arith.divf %74, %75 : vector<16x128xf32>
    %77 = vector.extract_strided_slice %60 {offsets = [0, 256], sizes = [16, 128], strides = [1, 1]} : vector<16x384xf32> to vector<16x128xf32>
    %78 = vector.extract_strided_slice %58 {offsets = [0, 256], sizes = [16, 128], strides = [1, 1]} : vector<16x384xf32> to vector<16x128xf32>
    %79 = arith.addf %78, %15 : vector<16x128xf32>
    %80 = arith.mulf %68, %79 : vector<16x128xf32>
    %81 = arith.addf %77, %80 : vector<16x128xf32>
    %82 = math.tanh %81 : vector<16x128xf32>
    %cst_27 = arith.constant 1.000000e+00 : f32
    %83 = vector.broadcast %cst_27 : f32 to vector<16x128xf32>
    %84 = arith.subf %83, %76 : vector<16x128xf32>
    %85 = arith.mulf %84, %82 : vector<16x128xf32>
    %86 = arith.mulf %76, %50 : vector<16x128xf32>
    %87 = arith.addf %85, %86 : vector<16x128xf32>
    %88 = arith.truncf %87 : vector<16x128xf32> to vector<16x128xbf16>
    %89 = arith.index_cast %55 : i32 to index
    %c0_28 = arith.constant 0 : index
    %90 = vector.load %arg6[%89, %c0_28] : memref<128x128xbf16, #tpu.memory_space<vmem>>, vector<16x128xbf16>
    tpu.vector_store %arg6[%89, %c0_28], %88 {strides = array<i32>} : memref<128x128xbf16, #tpu.memory_space<vmem>>, vector<16x128xbf16>,
    %c2_i32 = arith.constant 2 : i32
    %c16_i32_29 = arith.constant 16 : i32
    %91 = arith.muli %c2_i32, %c16_i32_29 : i32
    %92 = tpu.assume_multiple %91, 8 : i32
    %93 = arith.truncf %87 : vector<16x128xf32> to vector<16x128xbf16>
    %c0_30 = arith.constant 0 : index
    %c0_31 = arith.constant 0 : index
    %94 = vector.load %arg3[%c0_30, %c0_31] : memref<128x384xbf16, #tpu.memory_space<vmem>>, vector<128x384xbf16>
    %cst_32 = arith.constant dense<0.000000e+00> : vector<16x384xf32>
    %95 = tpu.matmul %93, %94, %cst_32 {dimension_numbers = #tpu.dot_dimension_numbers<[1], [0], [0], [1], [0, 0, 1, 1], [], []>} : vector<16x128xbf16>, vector<128x384xbf16>, vector<16x384xf32> -> vector<16x384xf32>
    %96 = arith.index_cast %92 : i32 to index
    %c0_33 = arith.constant 0 : index
    %97 = vector.load %arg7[%96, %c0_33] : memref<128x384xf32, #tpu.memory_space<vmem>>, vector<16x384xf32>
    %98 = vector.extract_strided_slice %97 {offsets = [0, 0], sizes = [16, 128], strides = [1, 1]} : vector<16x384xf32> to vector<16x128xf32>
    %99 = vector.extract_strided_slice %95 {offsets = [0, 0], sizes = [16, 128], strides = [1, 1]} : vector<16x384xf32> to vector<16x128xf32>
    %100 = arith.addf %98, %99 : vector<16x128xf32>
    %101 = arith.negf %100 : vector<16x128xf32>
    %102 = math.exp %101 : vector<16x128xf32>
    %cst_34 = arith.constant 1.000000e+00 : f32
    %103 = vector.broadcast %cst_34 : f32 to vector<16x128xf32>
    %104 = arith.addf %103, %102 : vector<16x128xf32>
    %105 = arith.divf %103, %104 : vector<16x128xf32>
    %106 = vector.extract_strided_slice %97 {offsets = [0, 128], sizes = [16, 128], strides = [1, 1]} : vector<16x384xf32> to vector<16x128xf32>
    %107 = vector.extract_strided_slice %95 {offsets = [0, 128], sizes = [16, 128], strides = [1, 1]} : vector<16x384xf32> to vector<16x128xf32>
    %108 = arith.addf %106, %107 : vector<16x128xf32>
    %109 = arith.negf %108 : vector<16x128xf32>
    %110 = math.exp %109 : vector<16x128xf32>
    %cst_35 = arith.constant 1.000000e+00 : f32
    %111 = vector.broadcast %cst_35 : f32 to vector<16x128xf32>
    %112 = arith.addf %111, %110 : vector<16x128xf32>
    %113 = arith.divf %111, %112 : vector<16x128xf32>
    %114 = vector.extract_strided_slice %97 {offsets = [0, 256], sizes = [16, 128], strides = [1, 1]} : vector<16x384xf32> to vector<16x128xf32>
    %115 = vector.extract_strided_slice %95 {offsets = [0, 256], sizes = [16, 128], strides = [1, 1]} : vector<16x384xf32> to vector<16x128xf32>
    %116 = arith.addf %115, %15 : vector<16x128xf32>
    %117 = arith.mulf %105, %116 : vector<16x128xf32>
    %118 = arith.addf %114, %117 : vector<16x128xf32>
    %119 = math.tanh %118 : vector<16x128xf32>
    %cst_36 = arith.constant 1.000000e+00 : f32
    %120 = vector.broadcast %cst_36 : f32 to vector<16x128xf32>
    %121 = arith.subf %120, %113 : vector<16x128xf32>
    %122 = arith.mulf %121, %119 : vector<16x128xf32>
    %123 = arith.mulf %113, %87 : vector<16x128xf32>
    %124 = arith.addf %122, %123 : vector<16x128xf32>
    %125 = arith.truncf %124 : vector<16x128xf32> to vector<16x128xbf16>
    %126 = arith.index_cast %92 : i32 to index
    %c0_37 = arith.constant 0 : index
    %127 = vector.load %arg6[%126, %c0_37] : memref<128x128xbf16, #tpu.memory_space<vmem>>, vector<16x128xbf16>
    tpu.vector_store %arg6[%126, %c0_37], %125 {strides = array<i32>} : memref<128x128xbf16, #tpu.memory_space<vmem>>, vector<16x128xbf16>,
    %c3_i32 = arith.constant 3 : i32
    %c16_i32_38 = arith.constant 16 : i32
    %128 = arith.muli %c3_i32, %c16_i32_38 : i32
    %129 = tpu.assume_multiple %128, 8 : i32
    %130 = arith.truncf %124 : vector<16x128xf32> to vector<16x128xbf16>
    %c0_39 = arith.constant 0 : index
    %c0_40 = arith.constant 0 : index
    %131 = vector.load %arg3[%c0_39, %c0_40] : memref<128x384xbf16, #tpu.memory_space<vmem>>, vector<128x384xbf16>
    %cst_41 = arith.constant dense<0.000000e+00> : vector<16x384xf32>
    %132 = tpu.matmul %130, %131, %cst_41 {dimension_numbers = #tpu.dot_dimension_numbers<[1], [0], [0], [1], [0, 0, 1, 1], [], []>} : vector<16x128xbf16>, vector<128x384xbf16>, vector<16x384xf32> -> vector<16x384xf32>
    %133 = arith.index_cast %129 : i32 to index
    %c0_42 = arith.constant 0 : index
    %134 = vector.load %arg7[%133, %c0_42] : memref<128x384xf32, #tpu.memory_space<vmem>>, vector<16x384xf32>
    %135 = vector.extract_strided_slice %134 {offsets = [0, 0], sizes = [16, 128], strides = [1, 1]} : vector<16x384xf32> to vector<16x128xf32>
    %136 = vector.extract_strided_slice %132 {offsets = [0, 0], sizes = [16, 128], strides = [1, 1]} : vector<16x384xf32> to vector<16x128xf32>
    %137 = arith.addf %135, %136 : vector<16x128xf32>
    %138 = arith.negf %137 : vector<16x128xf32>
    %139 = math.exp %138 : vector<16x128xf32>
    %cst_43 = arith.constant 1.000000e+00 : f32
    %140 = vector.broadcast %cst_43 : f32 to vector<16x128xf32>
    %141 = arith.addf %140, %139 : vector<16x128xf32>
    %142 = arith.divf %140, %141 : vector<16x128xf32>
    %143 = vector.extract_strided_slice %134 {offsets = [0, 128], sizes = [16, 128], strides = [1, 1]} : vector<16x384xf32> to vector<16x128xf32>
    %144 = vector.extract_strided_slice %132 {offsets = [0, 128], sizes = [16, 128], strides = [1, 1]} : vector<16x384xf32> to vector<16x128xf32>
    %145 = arith.addf %143, %144 : vector<16x128xf32>
    %146 = arith.negf %145 : vector<16x128xf32>
    %147 = math.exp %146 : vector<16x128xf32>
    %cst_44 = arith.constant 1.000000e+00 : f32
    %148 = vector.broadcast %cst_44 : f32 to vector<16x128xf32>
    %149 = arith.addf %148, %147 : vector<16x128xf32>
    %150 = arith.divf %148, %149 : vector<16x128xf32>
    %151 = vector.extract_strided_slice %134 {offsets = [0, 256], sizes = [16, 128], strides = [1, 1]} : vector<16x384xf32> to vector<16x128xf32>
    %152 = vector.extract_strided_slice %132 {offsets = [0, 256], sizes = [16, 128], strides = [1, 1]} : vector<16x384xf32> to vector<16x128xf32>
    %153 = arith.addf %152, %15 : vector<16x128xf32>
    %154 = arith.mulf %142, %153 : vector<16x128xf32>
    %155 = arith.addf %151, %154 : vector<16x128xf32>
    %156 = math.tanh %155 : vector<16x128xf32>
    %cst_45 = arith.constant 1.000000e+00 : f32
    %157 = vector.broadcast %cst_45 : f32 to vector<16x128xf32>
    %158 = arith.subf %157, %150 : vector<16x128xf32>
    %159 = arith.mulf %158, %156 : vector<16x128xf32>
    %160 = arith.mulf %150, %124 : vector<16x128xf32>
    %161 = arith.addf %159, %160 : vector<16x128xf32>
    %162 = arith.truncf %161 : vector<16x128xf32> to vector<16x128xbf16>
    %163 = arith.index_cast %129 : i32 to index
    %c0_46 = arith.constant 0 : index
    %164 = vector.load %arg6[%163, %c0_46] : memref<128x128xbf16, #tpu.memory_space<vmem>>, vector<16x128xbf16>
    tpu.vector_store %arg6[%163, %c0_46], %162 {strides = array<i32>} : memref<128x128xbf16, #tpu.memory_space<vmem>>, vector<16x128xbf16>,
    %c4_i32 = arith.constant 4 : i32
    %c16_i32_47 = arith.constant 16 : i32
    %165 = arith.muli %c4_i32, %c16_i32_47 : i32
    %166 = tpu.assume_multiple %165, 8 : i32
    %167 = arith.truncf %161 : vector<16x128xf32> to vector<16x128xbf16>
    %c0_48 = arith.constant 0 : index
    %c0_49 = arith.constant 0 : index
    %168 = vector.load %arg3[%c0_48, %c0_49] : memref<128x384xbf16, #tpu.memory_space<vmem>>, vector<128x384xbf16>
    %cst_50 = arith.constant dense<0.000000e+00> : vector<16x384xf32>
    %169 = tpu.matmul %167, %168, %cst_50 {dimension_numbers = #tpu.dot_dimension_numbers<[1], [0], [0], [1], [0, 0, 1, 1], [], []>} : vector<16x128xbf16>, vector<128x384xbf16>, vector<16x384xf32> -> vector<16x384xf32>
    %170 = arith.index_cast %166 : i32 to index
    %c0_51 = arith.constant 0 : index
    %171 = vector.load %arg7[%170, %c0_51] : memref<128x384xf32, #tpu.memory_space<vmem>>, vector<16x384xf32>
    %172 = vector.extract_strided_slice %171 {offsets = [0, 0], sizes = [16, 128], strides = [1, 1]} : vector<16x384xf32> to vector<16x128xf32>
    %173 = vector.extract_strided_slice %169 {offsets = [0, 0], sizes = [16, 128], strides = [1, 1]} : vector<16x384xf32> to vector<16x128xf32>
    %174 = arith.addf %172, %173 : vector<16x128xf32>
    %175 = arith.negf %174 : vector<16x128xf32>
    %176 = math.exp %175 : vector<16x128xf32>
    %cst_52 = arith.constant 1.000000e+00 : f32
    %177 = vector.broadcast %cst_52 : f32 to vector<16x128xf32>
    %178 = arith.addf %177, %176 : vector<16x128xf32>
    %179 = arith.divf %177, %178 : vector<16x128xf32>
    %180 = vector.extract_strided_slice %171 {offsets = [0, 128], sizes = [16, 128], strides = [1, 1]} : vector<16x384xf32> to vector<16x128xf32>
    %181 = vector.extract_strided_slice %169 {offsets = [0, 128], sizes = [16, 128], strides = [1, 1]} : vector<16x384xf32> to vector<16x128xf32>
    %182 = arith.addf %180, %181 : vector<16x128xf32>
    %183 = arith.negf %182 : vector<16x128xf32>
    %184 = math.exp %183 : vector<16x128xf32>
    %cst_53 = arith.constant 1.000000e+00 : f32
    %185 = vector.broadcast %cst_53 : f32 to vector<16x128xf32>
    %186 = arith.addf %185, %184 : vector<16x128xf32>
    %187 = arith.divf %185, %186 : vector<16x128xf32>
    %188 = vector.extract_strided_slice %171 {offsets = [0, 256], sizes = [16, 128], strides = [1, 1]} : vector<16x384xf32> to vector<16x128xf32>
    %189 = vector.extract_strided_slice %169 {offsets = [0, 256], sizes = [16, 128], strides = [1, 1]} : vector<16x384xf32> to vector<16x128xf32>
    %190 = arith.addf %189, %15 : vector<16x128xf32>
    %191 = arith.mulf %179, %190 : vector<16x128xf32>
    %192 = arith.addf %188, %191 : vector<16x128xf32>
    %193 = math.tanh %192 : vector<16x128xf32>
    %cst_54 = arith.constant 1.000000e+00 : f32
    %194 = vector.broadcast %cst_54 : f32 to vector<16x128xf32>
    %195 = arith.subf %194, %187 : vector<16x128xf32>
    %196 = arith.mulf %195, %193 : vector<16x128xf32>
    %197 = arith.mulf %187, %161 : vector<16x128xf32>
    %198 = arith.addf %196, %197 : vector<16x128xf32>
    %199 = arith.truncf %198 : vector<16x128xf32> to vector<16x128xbf16>
    %200 = arith.index_cast %166 : i32 to index
    %c0_55 = arith.constant 0 : index
    %201 = vector.load %arg6[%200, %c0_55] : memref<128x128xbf16, #tpu.memory_space<vmem>>, vector<16x128xbf16>
    tpu.vector_store %arg6[%200, %c0_55], %199 {strides = array<i32>} : memref<128x128xbf16, #tpu.memory_space<vmem>>, vector<16x128xbf16>,
    %c5_i32 = arith.constant 5 : i32
    %c16_i32_56 = arith.constant 16 : i32
    %202 = arith.muli %c5_i32, %c16_i32_56 : i32
    %203 = tpu.assume_multiple %202, 8 : i32
    %204 = arith.truncf %198 : vector<16x128xf32> to vector<16x128xbf16>
    %c0_57 = arith.constant 0 : index
    %c0_58 = arith.constant 0 : index
    %205 = vector.load %arg3[%c0_57, %c0_58] : memref<128x384xbf16, #tpu.memory_space<vmem>>, vector<128x384xbf16>
    %cst_59 = arith.constant dense<0.000000e+00> : vector<16x384xf32>
    %206 = tpu.matmul %204, %205, %cst_59 {dimension_numbers = #tpu.dot_dimension_numbers<[1], [0], [0], [1], [0, 0, 1, 1], [], []>} : vector<16x128xbf16>, vector<128x384xbf16>, vector<16x384xf32> -> vector<16x384xf32>
    %207 = arith.index_cast %203 : i32 to index
    %c0_60 = arith.constant 0 : index
    %208 = vector.load %arg7[%207, %c0_60] : memref<128x384xf32, #tpu.memory_space<vmem>>, vector<16x384xf32>
    %209 = vector.extract_strided_slice %208 {offsets = [0, 0], sizes = [16, 128], strides = [1, 1]} : vector<16x384xf32> to vector<16x128xf32>
    %210 = vector.extract_strided_slice %206 {offsets = [0, 0], sizes = [16, 128], strides = [1, 1]} : vector<16x384xf32> to vector<16x128xf32>
    %211 = arith.addf %209, %210 : vector<16x128xf32>
    %212 = arith.negf %211 : vector<16x128xf32>
    %213 = math.exp %212 : vector<16x128xf32>
    %cst_61 = arith.constant 1.000000e+00 : f32
    %214 = vector.broadcast %cst_61 : f32 to vector<16x128xf32>
    %215 = arith.addf %214, %213 : vector<16x128xf32>
    %216 = arith.divf %214, %215 : vector<16x128xf32>
    %217 = vector.extract_strided_slice %208 {offsets = [0, 128], sizes = [16, 128], strides = [1, 1]} : vector<16x384xf32> to vector<16x128xf32>
    %218 = vector.extract_strided_slice %206 {offsets = [0, 128], sizes = [16, 128], strides = [1, 1]} : vector<16x384xf32> to vector<16x128xf32>
    %219 = arith.addf %217, %218 : vector<16x128xf32>
    %220 = arith.negf %219 : vector<16x128xf32>
    %221 = math.exp %220 : vector<16x128xf32>
    %cst_62 = arith.constant 1.000000e+00 : f32
    %222 = vector.broadcast %cst_62 : f32 to vector<16x128xf32>
    %223 = arith.addf %222, %221 : vector<16x128xf32>
    %224 = arith.divf %222, %223 : vector<16x128xf32>
    %225 = vector.extract_strided_slice %208 {offsets = [0, 256], sizes = [16, 128], strides = [1, 1]} : vector<16x384xf32> to vector<16x128xf32>
    %226 = vector.extract_strided_slice %206 {offsets = [0, 256], sizes = [16, 128], strides = [1, 1]} : vector<16x384xf32> to vector<16x128xf32>
    %227 = arith.addf %226, %15 : vector<16x128xf32>
    %228 = arith.mulf %216, %227 : vector<16x128xf32>
    %229 = arith.addf %225, %228 : vector<16x128xf32>
    %230 = math.tanh %229 : vector<16x128xf32>
    %cst_63 = arith.constant 1.000000e+00 : f32
    %231 = vector.broadcast %cst_63 : f32 to vector<16x128xf32>
    %232 = arith.subf %231, %224 : vector<16x128xf32>
    %233 = arith.mulf %232, %230 : vector<16x128xf32>
    %234 = arith.mulf %224, %198 : vector<16x128xf32>
    %235 = arith.addf %233, %234 : vector<16x128xf32>
    %236 = arith.truncf %235 : vector<16x128xf32> to vector<16x128xbf16>
    %237 = arith.index_cast %203 : i32 to index
    %c0_64 = arith.constant 0 : index
    %238 = vector.load %arg6[%237, %c0_64] : memref<128x128xbf16, #tpu.memory_space<vmem>>, vector<16x128xbf16>
    tpu.vector_store %arg6[%237, %c0_64], %236 {strides = array<i32>} : memref<128x128xbf16, #tpu.memory_space<vmem>>, vector<16x128xbf16>,
    %c6_i32 = arith.constant 6 : i32
    %c16_i32_65 = arith.constant 16 : i32
    %239 = arith.muli %c6_i32, %c16_i32_65 : i32
    %240 = tpu.assume_multiple %239, 8 : i32
    %241 = arith.truncf %235 : vector<16x128xf32> to vector<16x128xbf16>
    %c0_66 = arith.constant 0 : index
    %c0_67 = arith.constant 0 : index
    %242 = vector.load %arg3[%c0_66, %c0_67] : memref<128x384xbf16, #tpu.memory_space<vmem>>, vector<128x384xbf16>
    %cst_68 = arith.constant dense<0.000000e+00> : vector<16x384xf32>
    %243 = tpu.matmul %241, %242, %cst_68 {dimension_numbers = #tpu.dot_dimension_numbers<[1], [0], [0], [1], [0, 0, 1, 1], [], []>} : vector<16x128xbf16>, vector<128x384xbf16>, vector<16x384xf32> -> vector<16x384xf32>
    %244 = arith.index_cast %240 : i32 to index
    %c0_69 = arith.constant 0 : index
    %245 = vector.load %arg7[%244, %c0_69] : memref<128x384xf32, #tpu.memory_space<vmem>>, vector<16x384xf32>
    %246 = vector.extract_strided_slice %245 {offsets = [0, 0], sizes = [16, 128], strides = [1, 1]} : vector<16x384xf32> to vector<16x128xf32>
    %247 = vector.extract_strided_slice %243 {offsets = [0, 0], sizes = [16, 128], strides = [1, 1]} : vector<16x384xf32> to vector<16x128xf32>
    %248 = arith.addf %246, %247 : vector<16x128xf32>
    %249 = arith.negf %248 : vector<16x128xf32>
    %250 = math.exp %249 : vector<16x128xf32>
    %cst_70 = arith.constant 1.000000e+00 : f32
    %251 = vector.broadcast %cst_70 : f32 to vector<16x128xf32>
    %252 = arith.addf %251, %250 : vector<16x128xf32>
    %253 = arith.divf %251, %252 : vector<16x128xf32>
    %254 = vector.extract_strided_slice %245 {offsets = [0, 128], sizes = [16, 128], strides = [1, 1]} : vector<16x384xf32> to vector<16x128xf32>
    %255 = vector.extract_strided_slice %243 {offsets = [0, 128], sizes = [16, 128], strides = [1, 1]} : vector<16x384xf32> to vector<16x128xf32>
    %256 = arith.addf %254, %255 : vector<16x128xf32>
    %257 = arith.negf %256 : vector<16x128xf32>
    %258 = math.exp %257 : vector<16x128xf32>
    %cst_71 = arith.constant 1.000000e+00 : f32
    %259 = vector.broadcast %cst_71 : f32 to vector<16x128xf32>
    %260 = arith.addf %259, %258 : vector<16x128xf32>
    %261 = arith.divf %259, %260 : vector<16x128xf32>
    %262 = vector.extract_strided_slice %245 {offsets = [0, 256], sizes = [16, 128], strides = [1, 1]} : vector<16x384xf32> to vector<16x128xf32>
    %263 = vector.extract_strided_slice %243 {offsets = [0, 256], sizes = [16, 128], strides = [1, 1]} : vector<16x384xf32> to vector<16x128xf32>
    %264 = arith.addf %263, %15 : vector<16x128xf32>
    %265 = arith.mulf %253, %264 : vector<16x128xf32>
    %266 = arith.addf %262, %265 : vector<16x128xf32>
    %267 = math.tanh %266 : vector<16x128xf32>
    %cst_72 = arith.constant 1.000000e+00 : f32
    %268 = vector.broadcast %cst_72 : f32 to vector<16x128xf32>
    %269 = arith.subf %268, %261 : vector<16x128xf32>
    %270 = arith.mulf %269, %267 : vector<16x128xf32>
    %271 = arith.mulf %261, %235 : vector<16x128xf32>
    %272 = arith.addf %270, %271 : vector<16x128xf32>
    %273 = arith.truncf %272 : vector<16x128xf32> to vector<16x128xbf16>
    %274 = arith.index_cast %240 : i32 to index
    %c0_73 = arith.constant 0 : index
    %275 = vector.load %arg6[%274, %c0_73] : memref<128x128xbf16, #tpu.memory_space<vmem>>, vector<16x128xbf16>
    tpu.vector_store %arg6[%274, %c0_73], %273 {strides = array<i32>} : memref<128x128xbf16, #tpu.memory_space<vmem>>, vector<16x128xbf16>,
    %c7_i32 = arith.constant 7 : i32
    %c16_i32_74 = arith.constant 16 : i32
    %276 = arith.muli %c7_i32, %c16_i32_74 : i32
    %277 = tpu.assume_multiple %276, 8 : i32
    %278 = arith.truncf %272 : vector<16x128xf32> to vector<16x128xbf16>
    %c0_75 = arith.constant 0 : index
    %c0_76 = arith.constant 0 : index
    %279 = vector.load %arg3[%c0_75, %c0_76] : memref<128x384xbf16, #tpu.memory_space<vmem>>, vector<128x384xbf16>
    %cst_77 = arith.constant dense<0.000000e+00> : vector<16x384xf32>
    %280 = tpu.matmul %278, %279, %cst_77 {dimension_numbers = #tpu.dot_dimension_numbers<[1], [0], [0], [1], [0, 0, 1, 1], [], []>} : vector<16x128xbf16>, vector<128x384xbf16>, vector<16x384xf32> -> vector<16x384xf32>
    %281 = arith.index_cast %277 : i32 to index
    %c0_78 = arith.constant 0 : index
    %282 = vector.load %arg7[%281, %c0_78] : memref<128x384xf32, #tpu.memory_space<vmem>>, vector<16x384xf32>
    %283 = vector.extract_strided_slice %282 {offsets = [0, 0], sizes = [16, 128], strides = [1, 1]} : vector<16x384xf32> to vector<16x128xf32>
    %284 = vector.extract_strided_slice %280 {offsets = [0, 0], sizes = [16, 128], strides = [1, 1]} : vector<16x384xf32> to vector<16x128xf32>
    %285 = arith.addf %283, %284 : vector<16x128xf32>
    %286 = arith.negf %285 : vector<16x128xf32>
    %287 = math.exp %286 : vector<16x128xf32>
    %cst_79 = arith.constant 1.000000e+00 : f32
    %288 = vector.broadcast %cst_79 : f32 to vector<16x128xf32>
    %289 = arith.addf %288, %287 : vector<16x128xf32>
    %290 = arith.divf %288, %289 : vector<16x128xf32>
    %291 = vector.extract_strided_slice %282 {offsets = [0, 128], sizes = [16, 128], strides = [1, 1]} : vector<16x384xf32> to vector<16x128xf32>
    %292 = vector.extract_strided_slice %280 {offsets = [0, 128], sizes = [16, 128], strides = [1, 1]} : vector<16x384xf32> to vector<16x128xf32>
    %293 = arith.addf %291, %292 : vector<16x128xf32>
    %294 = arith.negf %293 : vector<16x128xf32>
    %295 = math.exp %294 : vector<16x128xf32>
    %cst_80 = arith.constant 1.000000e+00 : f32
    %296 = vector.broadcast %cst_80 : f32 to vector<16x128xf32>
    %297 = arith.addf %296, %295 : vector<16x128xf32>
    %298 = arith.divf %296, %297 : vector<16x128xf32>
    %299 = vector.extract_strided_slice %282 {offsets = [0, 256], sizes = [16, 128], strides = [1, 1]} : vector<16x384xf32> to vector<16x128xf32>
    %300 = vector.extract_strided_slice %280 {offsets = [0, 256], sizes = [16, 128], strides = [1, 1]} : vector<16x384xf32> to vector<16x128xf32>
    %301 = arith.addf %300, %15 : vector<16x128xf32>
    %302 = arith.mulf %290, %301 : vector<16x128xf32>
    %303 = arith.addf %299, %302 : vector<16x128xf32>
    %304 = math.tanh %303 : vector<16x128xf32>
    %cst_81 = arith.constant 1.000000e+00 : f32
    %305 = vector.broadcast %cst_81 : f32 to vector<16x128xf32>
    %306 = arith.subf %305, %298 : vector<16x128xf32>
    %307 = arith.mulf %306, %304 : vector<16x128xf32>
    %308 = arith.mulf %298, %272 : vector<16x128xf32>
    %309 = arith.addf %307, %308 : vector<16x128xf32>
    %310 = arith.truncf %309 : vector<16x128xf32> to vector<16x128xbf16>
    %311 = arith.index_cast %277 : i32 to index
    %c0_82 = arith.constant 0 : index
    %312 = vector.load %arg6[%311, %c0_82] : memref<128x128xbf16, #tpu.memory_space<vmem>>, vector<16x128xbf16>
    tpu.vector_store %arg6[%311, %c0_82], %310 {strides = array<i32>} : memref<128x128xbf16, #tpu.memory_space<vmem>>, vector<16x128xbf16>,
    %c8_i32 = arith.constant 8 : i32
    %c0_83 = arith.constant 0 : index
    %c0_84 = arith.constant 0 : index
    %313 = vector.load %arg8[%c0_83, %c0_84] : memref<16x128xf32, #tpu.memory_space<vmem>>, vector<16x128xf32>
    tpu.vector_store %arg8[%c0_83, %c0_84], %309 {strides = array<i32>} : memref<16x128xf32, #tpu.memory_space<vmem>>, vector<16x128xf32>,
    return
  }
  func.func @transform_0(%arg0: i32) -> (i32, i32) {
    %c0_i32 = arith.constant 0 : i32
    %c0_i32_0 = arith.constant 0 : i32
    return %arg0, %c0_i32 : i32, i32
  }
  func.func @transform_1(%arg0: i32) -> (i32, i32) {
    %c0_i32 = arith.constant 0 : i32
    %c0_i32_0 = arith.constant 0 : i32
    %c0_i32_1 = arith.constant 0 : i32
    return %c0_i32, %c0_i32_0 : i32, i32
  }
  func.func @transform_2(%arg0: i32) -> (i32, i32) {
    %c0_i32 = arith.constant 0 : i32
    %c0_i32_0 = arith.constant 0 : i32
    %c0_i32_1 = arith.constant 0 : i32
    return %c0_i32, %c0_i32_0 : i32, i32
  }
  func.func @transform_3(%arg0: i32) -> (i32, i32) {
    %c0_i32 = arith.constant 0 : i32
    %c0_i32_0 = arith.constant 0 : i32
    %c0_i32_1 = arith.constant 0 : i32
    return %c0_i32, %c0_i32_0 : i32, i32
  }
  func.func @transform_4(%arg0: i32) -> (i32, i32) {
    %c0_i32 = arith.constant 0 : i32
    %c0_i32_0 = arith.constant 0 : i32
    %c0_i32_1 = arith.constant 0 : i32
    return %c0_i32, %c0_i32_0 : i32, i32
  }
  func.func @transform_5(%arg0: i32) -> (i32, i32) {
    %c0_i32 = arith.constant 0 : i32
    %c0_i32_0 = arith.constant 0 : i32
    return %arg0, %c0_i32 : i32, i32
  }
}

</mosaic_0001>

<bundles_post_ra>
// kernel: tpu_custom_call.1
= control target key start
LH: loop header
LB: loop body
LE: loop exit
PB: predicated region body
PF: predicated region fallthrough
CT: control target
= control target key end

     0   :  { %10 = vsyncpa [#allocation5], 0  ;;  %s4266_s0 = inlined_call_operand.vmem [shape: f32[128,1], index: 0, kind: input, shape index: {}]   ;;  %s4267_s1 = inlined_call_operand.vmem [shape: bf16[1,384], index: 1, kind: input, shape index: {}]   ;;  %s4268_s2 = inlined_call_operand.hbm [shape: bf16[128,384], index: 2, kind: input, shape index: {}]   ;;  %s4269_s3 = inlined_call_operand.vmem [shape: f32[1,384], index: 3, kind: input, shape index: {}]   ;;  %s4270_s4 = inlined_call_operand.vmem [shape: f32[1,128], index: 4, kind: input, shape index: {}]   ;;  %s4271_s5 = inlined_call_operand.hbm [shape: bf16[128,128], index: 5, kind: output, shape index: {}]  }
   0x1   :  { %11 = vsyncpa [#allocation6], 0  ;;  %s3710_s18 = smov [#allocation4]  }
   0x2   :  { %s21_s19 = sshll.u32 %s3710_s18, 4  ;;  %s22_s19 = int_to_ptr.vmem [resolvable:$true] %s21_s19 }
   0x3   :  { %s3674_s20 = scalar_lea.vmem %s22_s19, 3072  ;;  %p3679_p1 = scmp.lt.s32.totalorder %s22_s19, %s22_s19 }
   0x4   :  { %p3675_p0 = scmp.ne.s32.totalorder %s22_s19, %s3674_s20  ;;  %p3680_p2 = scmp.lt.s32.totalorder %s3674_s20, %s3674_s20 }
   0x6   :  { %p3681_p3 = por %p3680_p2, %p3679_p1 }
   0x8   :  { %p3682_p4 = pnand %p3681_p3, %p3675_p0 }
   0xa   :  { %3685 = shalt.err (!%p3682_p4)
}
   0xb   :  { %s3711_s21 = smov 192   ;;  %s3712_s22 = smov 12  }
   0xc   :  { %27 = dma.hbm_to_vmem [thread:$0]  %s4268_s2, 3072, %s22_s19, [#allocation5], %s3711_s21, %s3711_s21, %s3712_s22  }
   0xd   :  { %3706 = dma.done.wait [#allocation5], 3072  }
   0xe   :  { %3707 = vsyncadd [#allocation5], 4294964224  ;;  %v3713_v0 = vmov 0.0   ;;  %v3714_v1 = vmov 0   ;;  %vm3715_vm0 = vmmov 0   ;;  %v42_v16 = vld [vmem:[%s4266_s0] sm:$0xff]  ;;  %v141_v51 = vlaneseq }
   0xf   :  { %3197 = vmatprep.subr.bf16.mxu1 %v3713_v0  ;;  %531 = vmatprep.mubr.bf16.mxu0 %v3714_v1  ;;  %v3759_v2 = vld [vmem:[#allocation4 + $0xac] ss:$12 sps:$4 sm:$0xff]   ;;  %v3761_v3 = vld [vmem:[#allocation4 + $0xa8] ss:$12 sps:$4 sm:$0xff]   ;;  %v3767_v5 = vld [vmem:[#allocation4 + $0x90] ss:$12 sps:$4 sm:$0xff]  }
  0x10   :  { %3213 = vmatprep.mubr.msk.bf16.mxu1 %vm3715_vm0, %v3713_v0  ;;  %3367 = vset.pattern.permute.xlu0 %v3714_v1  ;;  %v3764_v4 = vld [vmem:[#allocation4 + $0x94] ss:$12 sps:$4 sm:$0xff]   ;;  %v3770_v6 = vld [vmem:[#allocation4 + $0x7c] ss:$12 sps:$4 sm:$0xff]   ;;  %v3773_v7 = vld [vmem:[#allocation4 + $0x78] ss:$12 sps:$4 sm:$0xff]  }
  0x11   :  { %3368 = vset.pattern.permute.xlu1 %v3714_v1  ;;  %499 = vmatprep.subr.bf16.mxu0 %v3759_v2  ;;  %v3776_v8 = vld [vmem:[#allocation4 + $0x64] ss:$12 sps:$4 sm:$0xff]   ;;  %v3779_v10 = vld [vmem:[#allocation4 + $0x60] ss:$12 sps:$4 sm:$0xff]   ;;  %v3785_v13 = vld [vmem:[#allocation4 + $0x48] ss:$12 sps:$4 sm:$0xff]  }
  0x12   :  { %500 = vmatpush1.bf16.msra.mxu0 %v3761_v3  ;;  %v3390_v9 = vld [vmem:[#allocation4 + $0xb0] ss:$12 sps:$4 sm:$0xff]   ;;  %v3781_v11 = vld [vmem:[#allocation4 + $0x4c] ss:$12 sps:$4 sm:$0xff]   ;;  %v3788_v14 = vld [vmem:[#allocation4 + $0x34] ss:$12 sps:$4 sm:$0xff]   ;;  %62 = vperm.xlu0 %3367, %v42_v16  }
  0x13   :  { %501 = vmatprep.subr.bf16.mxu0 %v3764_v4  ;;  %3198 = vmatpush3.bf16.msra.mxu1 %v3390_v9  ;;  %v3394_v12 = vld [vmem:[#allocation4 + $0x98] ss:$12 sps:$4 sm:$0xff]   ;;  %v3395_v15 = vld [vmem:[#allocation4 + $0x80] ss:$12 sps:$4 sm:$0xff]   ;;  %v3796_v17 = vld [vmem:[#allocation4 + $0x30] ss:$12 sps:$4 sm:$0xff]  }
  0x14   :  { %3199 = vmatprep.subr.bf16.mxu1 %v3713_v0  ;;  %v3799_v18 = vld [vmem:[#allocation4 + $0x1c] ss:$12 sps:$4 sm:$0xff]   ;;  %v3804_v21 = vld [vmem:[#allocation4 + $0x18] ss:$12 sps:$4 sm:$0xff]   ;;  %v3814_v25 = vld [vmem:[#allocation4] ss:$12 sps:$4 sm:$0xff]  }
  0x15   :  { %v3396_v19 = vld [vmem:[#allocation4 + $0x68] ss:$12 sps:$4 sm:$0xff]   ;;  %v3807_v22 = vld [vmem:[#allocation4 + $0x4] ss:$12 sps:$4 sm:$0xff]   ;;  %v3399_v28 = vld [vmem:[#allocation4 + $0x20] ss:$12 sps:$4 sm:$0xff]  }
  0x16   :  { %502 = vmatpush1.bf16.msra.mxu0 %v3767_v5  ;;  %v43_v20 = vld [vmem:[%s4266_s0 + $0x8] sm:$0xff]  ;;  %v3397_v23 = vld [vmem:[#allocation4 + $0x50] ss:$12 sps:$4 sm:$0xff]   ;;  %v46_v24 = vld [vmem:[%s4266_s0 + $0x20] sm:$0xff]  ;;  %v3716_v30 = vmov 0.0|0.0   ;;  %v142_v52 = vshrl.u32 %v141_v51, 7 }
  0x17   :  { %503 = vmatprep.subr.bf16.mxu0 %v3770_v6  ;;  %3200 = vmatpush3.bf16.msra.mxu1 %v3394_v12  ;;  %v3398_v26 = vld [vmem:[#allocation4 + $0x38] ss:$12 sps:$4 sm:$0xff]   ;;  %v48_v27 = vld [vmem:[%s4266_s0 + $0x30] sm:$0xff]  ;;  %v3403_v37 = vld [vmem:[#allocation4 + $0x80] ss:$12 sps:$4 sm:$0xff]  }
  0x18   :  { %3201 = vmatprep.subr.bf16.mxu1 %v3713_v0  ;;  %67 = vperm.xlu0 %3367, %v43_v20   ;;  %v50_v29 = vld [vmem:[%s4266_s0 + $0x40] sm:$0xff]  ;;  %v3400_v31 = vld [vmem:[#allocation4 + $0x8] ss:$12 sps:$4 sm:$0xff]   ;;  %v3401_v35 = vld [vmem:[#allocation4 + $0xb0] ss:$12 sps:$4 sm:$0xff]   ;;  %v143_v55 = vsub.s32 0, %v142_v52 }
  0x19   :  { %v52_v32 = vld [vmem:[%s4266_s0 + $0x50] sm:$0xff]  ;;  %v54_v33 = vld [vmem:[%s4266_s0 + $0x60] sm:$0xff]  ;;  %v45_v44 = vld [vmem:[%s4266_s0 + $0x18] sm:$0xff]  ;;  %v147_v59 = vsub.s32 2, %v142_v52  ;;  %v224_v16 = vsub.s32 1, %v142_v52 }
  0x1a   :  { %504 = vmatpush1.bf16.msra.mxu0 %v3773_v7  ;;  %v56_v34 = vld [vmem:[%s4266_s0 + $0x70] sm:$0xff]  ;;  %v3402_v36 = vld [vmem:[#allocation4 + $0x98] ss:$12 sps:$4 sm:$0xff]   ;;  %v3407_v41 = vld [vmem:[#allocation4 + $0x20] ss:$12 sps:$4 sm:$0xff]  }
  0x1b   :  { %505 = vmatprep.subr.bf16.mxu0 %v3776_v8  ;;  %3202 = vmatpush3.bf16.msra.mxu1 %v3395_v15  ;;  %v3404_v38 = vld [vmem:[#allocation4 + $0x68] ss:$12 sps:$4 sm:$0xff]   ;;  %v3405_v39 = vld [vmem:[#allocation4 + $0x50] ss:$12 sps:$4 sm:$0xff]   ;;  %v3406_v40 = vld [vmem:[#allocation4 + $0x38] ss:$12 sps:$4 sm:$0xff]  }
  0x1c   :  { %3203 = vmatprep.subr.bf16.mxu1 %v3713_v0  ;;  %82 = vperm.xlu0 %3367, %v46_v24   ;;  %v3408_v42 = vld [vmem:[#allocation4 + $0x8] ss:$12 sps:$4 sm:$0xff]   ;;  %v49_v46 = vld [vmem:[%s4266_s0 + $0x38] sm:$0xff]  ;;  %v58_v53 = vld [vmem:[%s4267_s1] sm:$0x7] }
  0x1d   :  { %v44_v43 = vld [vmem:[%s4266_s0 + $0x10] sm:$0xff]  ;;  %v47_v45 = vld [vmem:[%s4266_s0 + $0x28] sm:$0xff]  ;;  %v53_v48 = vld [vmem:[%s4266_s0 + $0x58] sm:$0xff]  ;;  %v59_v54 = vunpack.c.l.bf16 %v58_v53 }
  0x1e   :  { %506 = vmatpush1.bf16.msra.mxu0 %v3779_v10  ;;  %72 = vperm.xlu1 %3368, %v44_v43   ;;  %v51_v47 = vld [vmem:[%s4266_s0 + $0x48] sm:$0xff]  ;;  %v57_v50 = vld [vmem:[%s4266_s0 + $0x78] sm:$0xff]  ;;  %v216_v58 = vld [vmem:[%s4269_s3] sm:$0x7] }
  0x1f   :  { %507 = vmatprep.subr.bf16.mxu0 %v3781_v11  ;;  %3204 = vmatpush3.bf16.msra.mxu1 %v3396_v19  ;;  %v55_v49 = vld [vmem:[%s4266_s0 + $0x68] sm:$0xff]  ;;  %v144_v56 = vrot.slane %v59_v54, %v143_v55  ;;  %v3900_v62 = vrot.slane %v216_v58, %v143_v55  ;;  %v148_v63 = vrot.slane %v59_v54, %v147_v59  ;;  %v3918_v51 = vld [vmem:[%s4270_s4] ss:$0 sm:$0xff] }
  0x20   :  { %3205 = vmatprep.subr.bf16.mxu1 %v3713_v0  ;;  %92 = vperm.xlu0 %3367, %v48_v27   ;;  %v3907_v27 = vrot.slane %v216_v58, %v224_v16 }
  0x21   :  { %v3894_v57 = vrot.slane %v144_v56, %v143_v55  ;;  %v3903_v12 = vrot.slane %v148_v63, %v143_v55 }
  0x22   :  { %508 = vmatpush1.bf16.msra.mxu0 %v3785_v13  ;;  %77 = vperm.xlu1 %3368, %v45_v44  }
  0x23   :  { %509 = vmatprep.subr.bf16.mxu0 %v3788_v14  ;;  %3206 = vmatpush3.bf16.msra.mxu1 %v3397_v23 }
  0x24   :  { %3207 = vmatprep.subr.bf16.mxu1 %v3713_v0  ;;  %102 = vperm.xlu0 %3367, %v50_v29  }
  0x26   :  { %510 = vmatpush1.bf16.msra.mxu0 %v3796_v17  ;;  %87 = vperm.xlu1 %3368, %v47_v45   ;;  %v151_v45 = vsub.s32 4, %v142_v52 }
  0x27   :  { %511 = vmatprep.subr.bf16.mxu0 %v3799_v18  ;;  %3208 = vmatpush3.bf16.msra.mxu1 %v3398_v26 }
  0x28   :  { %3209 = vmatprep.subr.bf16.mxu1 %v3713_v0  ;;  %112 = vperm.xlu0 %3367, %v52_v32  }
  0x2a   :  { %512 = vmatpush1.bf16.msra.mxu0 %v3804_v21  ;;  %97 = vperm.xlu1 %3368, %v49_v46  }
  0x2b   :  { %513 = vmatprep.subr.bf16.mxu0 %v3807_v22  ;;  %3210 = vmatpush3.bf16.msra.mxu1 %v3399_v28 }
  0x2c   :  { %3211 = vmatprep.subr.bf16.mxu1 %v3713_v0  ;;  %122 = vperm.xlu0 %3367, %v54_v33  }
  0x2e   :  { %514 = vmatpush1.bf16.msra.mxu0 %v3814_v25  ;;  %107 = vperm.xlu1 %3368, %v51_v47  }
  0x2f   :  { %806 = vmatprep.subr.bf16.mxu0 %v3759_v2  ;;  %3212 = vmatpush3.bf16.msra.mxu1 %v3400_v31 }
  0x30   :  { %3217 = vmatprep.subr.bf16.mxu1 %v3713_v0  ;;  %132 = vperm.xlu0 %3367, %v56_v34  }
  0x31   :  { %532 = vmatmul.mubr.bf16.vlgmr.msra.gmra.mxu0 %v3716_v30 }
  0x32   :  { %807 = vmatpush1.bf16.msra.mxu0 %v3761_v3  ;;  %838 = vmatprep.mubr.bf16.mxu0 %v3714_v1 }
  0x33   :  { %808 = vmatprep.subr.bf16.mxu0 %v3764_v4  ;;  %3214 = vmatmul.mubr.bf16.vlgmr.msra.gmra.mxu1 %v3716_v30 }
  0x34   :  { %3233 = vmatprep.mubr.msk.bf16.mxu1 %vm3715_vm0, %v3713_v0  ;;  %3218 = vmatpush3.bf16.msra.mxu1 %v3401_v35 }
  0x35   :  { %3219 = vmatprep.subr.bf16.mxu1 %v3713_v0  ;;  %117 = vperm.xlu1 %3368, %v53_v48   ;;  %v152_v48 = vrot.slane %v59_v54, %v151_v45 }
  0x36   :  { %809 = vmatpush1.bf16.msra.mxu0 %v3767_v5 }
  0x37   :  { %810 = vmatprep.subr.bf16.mxu0 %v3770_v6 }
  0x38   :  { %3220 = vmatpush3.bf16.msra.mxu1 %v3402_v36 }
  0x39   :  { %3221 = vmatprep.subr.bf16.mxu1 %v3713_v0  ;;  %127 = vperm.xlu1 %3368, %v55_v49  }
  0x3a   :  { %811 = vmatpush1.bf16.msra.mxu0 %v3773_v7 }
  0x3b   :  { %812 = vmatprep.subr.bf16.mxu0 %v3776_v8 }
  0x3c   :  { %3222 = vmatpush3.bf16.msra.mxu1 %v3403_v37 }
  0x3d   :  { %3223 = vmatprep.subr.bf16.mxu1 %v3713_v0  ;;  %137 = vperm.xlu1 %3368, %v57_v50   ;;  %v3913_v50 = vrot.slane %v152_v48, %v143_v55 }
  0x3e   :  { %813 = vmatpush1.bf16.msra.mxu0 %v3779_v10 }
  0x3f   :  { %814 = vmatprep.subr.bf16.mxu0 %v3781_v11 }
  0x40   :  { %3224 = vmatpush3.bf16.msra.mxu1 %v3404_v38 }
  0x41   :  { %3225 = vmatprep.subr.bf16.mxu1 %v3713_v0 }
  0x42   :  { %815 = vmatpush1.bf16.msra.mxu0 %v3785_v13 }
  0x43   :  { %816 = vmatprep.subr.bf16.mxu0 %v3788_v14 }
  0x44   :  { %3226 = vmatpush3.bf16.msra.mxu1 %v3405_v39 }
  0x45   :  { %3227 = vmatprep.subr.bf16.mxu1 %v3713_v0 }
  0x46   :  { %817 = vmatpush1.bf16.msra.mxu0 %v3796_v17 }
  0x47   :  { %818 = vmatprep.subr.bf16.mxu0 %v3799_v18 }
  0x48   :  { %3228 = vmatpush3.bf16.msra.mxu1 %v3406_v40 }
  0x49   :  { %3229 = vmatprep.subr.bf16.mxu1 %v3713_v0 }
  0x4a   :  { %819 = vmatpush1.bf16.msra.mxu0 %v3804_v21 }
  0x4b   :  { %820 = vmatprep.subr.bf16.mxu0 %v3807_v22 }
  0x4c   :  { %3230 = vmatpush3.bf16.msra.mxu1 %v3407_v41 }
  0x4d   :  { %3231 = vmatprep.subr.bf16.mxu1 %v3713_v0 }
  0x4e   :  { %821 = vmatpush1.bf16.msra.mxu0 %v3814_v25 }
  0x4f   :  { %1114 = vmatprep.subr.bf16.mxu0 %v3759_v2 }
  0x50   :  { %3232 = vmatpush3.bf16.msra.mxu1 %v3408_v42 }
  0x51   :  { %3237 = vmatprep.subr.bf16.mxu1 %v3713_v0 }
  0x8d   :  { %v63_v60 = vpop.permute.xlu0 %62 }
  0x8e   :  { %v168_v61 = vmul.f32 %v3894_v57, %v63_v60  ;;  %v169_v24 = vmul.f32 %v3903_v12, %v63_v60  ;;  %v170_v63 = vmul.f32 %v3913_v50, %v63_v60 }
  0x90   :  { %v233_v2 = vadd.f32 %v3900_v62, %v168_v61  ;;  %v234_v32 = vadd.f32 %v3907_v27, %v169_v24  ;;  %v3920_v61 = vrot.slane %v216_v58, %v147_v59 }
  0x92   :  { %v235_v16 = vadd.f32 %v3920_v61, %v170_v63 }
  0x93   :  { %v68_v9 = vpop.permute.xlu0 %67 }
  0x94   :  { %v171_v15 = vmul.f32 %v3894_v57, %v68_v9  ;;  %v172_v29 = vmul.f32 %v3903_v12, %v68_v9  ;;  %v173_v55 = vmul.f32 %v3913_v50, %v68_v9 }
  0x96   :  { %v236_v28 = vadd.f32 %v3900_v62, %v171_v15  ;;  %v237_v35 = vadd.f32 %v3907_v27, %v172_v29  ;;  %v238_v58 = vadd.f32 %v3920_v61, %v173_v55 }
  0xf1   :  { %v533_v19 = vpop.f32.mrf.mxu0 }
  0xf2   :  { %v592_v20 = vadd.f32 %v533_v19, %v233_v2 }
  0xf3   :  { %v535_v23 = vpop.f32.mrf.mxu0  ;;  %v576_v37 = vpop.f32.mrf.mxu1 }
  0xf4   :  { %v2853_v26 = vmul.f32 -1.442695, %v592_v20  ;;  %v606_v36 = vadd.f32 %v535_v23, %v234_v32  ;;  %v620_v52 = vadd.f32 %v3918_v51, %v576_v37 }
  0xf5   :  { %v537_v30 = vpop.f32.mrf.mxu0  ;;  %v3215_v39 = vpop.f32.mrf.mxu1 }
  0xf6   :  { %3505 = vpow2.f32 %v2853_v26  ;;  %v593_v31 = vadd.f32 %v537_v30, %v236_v28  ;;  %v2855_v40 = vmul.f32 -1.442695, %v606_v36 }
  0xf7   :  { %v539_v34 = vpop.f32.mrf.mxu0  ;;  %v579_v41 = vpop.f32.mrf.mxu1 }
  0xf8   :  { %v2854_v33 = vmul.f32 -1.442695, %v593_v31  ;;  %v607_v38 = vadd.f32 %v539_v34, %v237_v35  ;;  %v621_v23 = vadd.f32 %v3918_v51, %v579_v41 }
  0xf9   :  { %v3216_v43 = vpop.f32.mrf.mxu1 }
  0xfa   :  { %3507 = vpow2.f32 %v2854_v33  ;;  %v2856_v42 = vmul.f32 -1.442695, %v607_v38 }
  0xfb   :  { %3509 = vpow2.f32 %v2855_v40 }
  0xfc   :  { %3511 = vpow2.f32 %v2856_v42 }
 0x103   :  { %v3506_v44 = vpop.eup %3505 }
 0x104   :  { %v600_v46 = vadd.f32 1.0, %v3506_v44 }
 0x106   :  { %3513 = vrcp.f32 %v600_v46 }
 0x107   :  { %v3508_v47 = vpop.eup %3507 }
 0x108   :  { %v601_v49 = vadd.f32 1.0, %v3508_v47  ;;  %v3510_v53 = vpop.eup %3509 }
 0x109   :  { %v3512_v56 = vpop.eup %3511  ;;  %v614_v2 = vadd.f32 1.0, %v3510_v53 }
 0x10a   :  { %3515 = vrcp.f32 %v601_v49  ;;  %v615_v54 = vadd.f32 1.0, %v3512_v56 }
 0x10b   :  { %3517 = vrcp.f32 %v614_v2 }
 0x10c   :  { %3519 = vrcp.f32 %v615_v54 }
 0x113   :  { %v3514_v15 = vpop.eup %3513 }
 0x114   :  { %v622_v19 = vmul.f32 %v3514_v15, %v620_v52 }
 0x116   :  { %v624_v20 = vadd.f32 %v622_v19, %v235_v16 }
 0x117   :  { %v3516_v24 = vpop.eup %3515 }
 0x118   :  { %3521 = vtanh.f32 %v624_v20  ;;  %v623_v59 = vmul.f32 %v3516_v24, %v621_v23  ;;  %v3518_v26 = vpop.eup %3517 }
 0x119   :  { %v3520_v28 = vpop.eup %3519  ;;  %v628_v30 = vsub.f32 1.0, %v3518_v26  ;;  %v632_v34 = vmul.f32 0.0, %v3518_v26 }
 0x11a   :  { %v625_v60 = vadd.f32 %v623_v59, %v238_v58  ;;  %v629_v31 = vsub.f32 1.0, %v3520_v28  ;;  %v633_v35 = vmul.f32 0.0, %v3520_v28 }
 0x11c   :  { %3523 = vtanh.f32 %v625_v60 }
 0x125   :  { %v3522_v29 = vpop.eup %3521 }
 0x126   :  { %v630_v32 = vmul.f32 %v3522_v29, %v628_v30 }
 0x128   :  { %v3928_v36 = vadd.f32 %v632_v34, %v630_v32 }
 0x129   :  { %v3524_v9 = vpop.eup %3523 }
 0x12a   :  { %v631_v33 = vmul.f32 %v3524_v9, %v629_v31 }
 0x12c   :  { %v3930_v37 = vadd.f32 %v633_v35, %v631_v33 }
 0x12e   :  { %v636_v38 = vpack.c.bf16 %v3930_v37, %v3928_v36 }
 0x130   :  { %3089 = vst [vmem:[#allocation7] sm:$0xff] %v636_v38   ;;  %839 = vmatmul.mubr.bf16.vlgmr.msra.gmra.mxu0 %v636_v38  ;;  %3234 = vmatmul.mubr.bf16.vlgmr.msra.gmra.mxu1 %v636_v38 }
 0x131   :  { %1115 = vmatpush1.bf16.msra.mxu0 %v3761_v3  ;;  %1146 = vmatprep.mubr.bf16.mxu0 %v3714_v1  ;;  %v3409_v3 = vld [vmem:[#allocation4 + $0xb0] ss:$12 sps:$4 sm:$0xff]  }
 0x132   :  { %1116 = vmatprep.subr.bf16.mxu0 %v3764_v4  ;;  %3253 = vmatprep.mubr.msk.bf16.mxu1 %vm3715_vm0, %v3713_v0  ;;  %v3410_v4 = vld [vmem:[#allocation4 + $0x98] ss:$12 sps:$4 sm:$0xff]  }
 0x133   :  { %3238 = vmatpush3.bf16.msra.mxu1 %v3409_v3 }
 0x134   :  { %3239 = vmatprep.subr.bf16.mxu1 %v3713_v0 }
 0x135   :  { %1117 = vmatpush1.bf16.msra.mxu0 %v3767_v5  ;;  %v3411_v5 = vld [vmem:[#allocation4 + $0x80] ss:$12 sps:$4 sm:$0xff]  }
 0x136   :  { %1118 = vmatprep.subr.bf16.mxu0 %v3770_v6  ;;  %v3412_v6 = vld [vmem:[#allocation4 + $0x68] ss:$12 sps:$4 sm:$0xff]  }
 0x137   :  { %3240 = vmatpush3.bf16.msra.mxu1 %v3410_v4 }
 0x138   :  { %3241 = vmatprep.subr.bf16.mxu1 %v3713_v0 }
 0x139   :  { %1119 = vmatpush1.bf16.msra.mxu0 %v3773_v7  ;;  %v3413_v7 = vld [vmem:[#allocation4 + $0x50] ss:$12 sps:$4 sm:$0xff]  }
 0x13a   :  { %1120 = vmatprep.subr.bf16.mxu0 %v3776_v8  ;;  %v3414_v8 = vld [vmem:[#allocation4 + $0x38] ss:$12 sps:$4 sm:$0xff]  }
 0x13b   :  { %3242 = vmatpush3.bf16.msra.mxu1 %v3411_v5 }
 0x13c   :  { %3243 = vmatprep.subr.bf16.mxu1 %v3713_v0 }
 0x13d   :  { %1121 = vmatpush1.bf16.msra.mxu0 %v3779_v10  ;;  %v3415_v10 = vld [vmem:[#allocation4 + $0x20] ss:$12 sps:$4 sm:$0xff]  }
 0x13e   :  { %1122 = vmatprep.subr.bf16.mxu0 %v3781_v11  ;;  %v3416_v11 = vld [vmem:[#allocation4 + $0x8] ss:$12 sps:$4 sm:$0xff]  }
 0x13f   :  { %3244 = vmatpush3.bf16.msra.mxu1 %v3412_v6 }
 0x140   :  { %3245 = vmatprep.subr.bf16.mxu1 %v3713_v0 }
 0x141   :  { %1123 = vmatpush1.bf16.msra.mxu0 %v3785_v13  ;;  %v73_v13 = vpop.permute.xlu1 %72 }
 0x142   :  { %1124 = vmatprep.subr.bf16.mxu0 %v3788_v14  ;;  %v174_v14 = vmul.f32 %v3894_v57, %v73_v13  ;;  %v175_v42 = vmul.f32 %v3903_v12, %v73_v13  ;;  %v176_v59 = vmul.f32 %v3913_v50, %v73_v13 }
 0x143   :  { %3246 = vmatpush3.bf16.msra.mxu1 %v3413_v7 }
 0x144   :  { %3247 = vmatprep.subr.bf16.mxu1 %v3713_v0  ;;  %v240_v53 = vadd.f32 %v3907_v27, %v175_v42  ;;  %v241_v30 = vadd.f32 %v3920_v61, %v176_v59  ;;  %v3998_v42 = vld [vmem:[#allocation4 + $0x7c] ss:$12 sps:$4 sm:$0xff]  }
 0x145   :  { %1125 = vmatpush1.bf16.msra.mxu0 %v3796_v17  ;;  %v239_v17 = vadd.f32 %v3900_v62, %v174_v14 }
 0x146   :  { %1126 = vmatprep.subr.bf16.mxu0 %v3799_v18  ;;  %v78_v18 = vpop.permute.xlu1 %77 }
 0x147   :  { %3248 = vmatpush3.bf16.msra.mxu1 %v3414_v8  ;;  %v178_v45 = vmul.f32 %v3903_v12, %v78_v18  ;;  %v179_v31 = vmul.f32 %v3913_v50, %v78_v18 }
 0x148   :  { %3249 = vmatprep.subr.bf16.mxu1 %v3713_v0 }
 0x149   :  { %1127 = vmatpush1.bf16.msra.mxu0 %v3804_v21  ;;  %v177_v21 = vmul.f32 %v3894_v57, %v78_v18  ;;  %v243_v52 = vadd.f32 %v3907_v27, %v178_v45  ;;  %v244_v35 = vadd.f32 %v3920_v61, %v179_v31  ;;  %v4005_v45 = vld [vmem:[#allocation4 + $0x64] ss:$12 sps:$4 sm:$0xff]  }
 0x14a   :  { %1128 = vmatprep.subr.bf16.mxu0 %v3807_v22 }
 0x14b   :  { %3250 = vmatpush3.bf16.msra.mxu1 %v3415_v10  ;;  %v242_v44 = vadd.f32 %v3900_v62, %v177_v21 }
 0x14c   :  { %3251 = vmatprep.subr.bf16.mxu1 %v3713_v0 }
 0x14d   :  { %1129 = vmatpush1.bf16.msra.mxu0 %v3814_v25 }
 0x14f   :  { %3252 = vmatpush3.bf16.msra.mxu1 %v3416_v11 }
 0x150   :  { %3257 = vmatprep.subr.bf16.mxu1 %v3713_v0 }
 0x1f0   :  { %v840_v22 = vpop.f32.mrf.mxu0  ;;  %v883_v25 = vpop.f32.mrf.mxu1 }
 0x1f1   :  { %v899_v39 = vadd.f32 %v840_v22, %v239_v17  ;;  %v927_v60 = vadd.f32 %v3918_v51, %v883_v25  ;;  %v3985_v25 = vld [vmem:[#allocation4 + $0xac] ss:$12 sps:$4 sm:$0xff]  }
 0x1f2   :  { %v842_v40 = vpop.f32.mrf.mxu0  ;;  %v3235_v41 = vpop.f32.mrf.mxu1  ;;  %1422 = vmatprep.subr.bf16.mxu0 %v3985_v25 }
 0x1f3   :  { %v2883_v43 = vmul.f32 -1.442695, %v899_v39  ;;  %v913_v2 = vadd.f32 %v842_v40, %v240_v53  ;;  %v3991_v39 = vld [vmem:[#allocation4 + $0x94] ss:$12 sps:$4 sm:$0xff]   ;;  %v3994_v40 = vld [vmem:[#allocation4 + $0x90] ss:$12 sps:$4 sm:$0xff]  }
 0x1f4   :  { %v844_v46 = vpop.f32.mrf.mxu0  ;;  %v886_v47 = vpop.f32.mrf.mxu1  ;;  %v3424_v41 = vld [vmem:[#allocation4 + $0x98] ss:$12 sps:$4 sm:$0xff]   ;;  %v3436_v53 = vld [vmem:[#allocation4 + $0x50] ss:$12 sps:$4 sm:$0xff]  }
 0x1f5   :  { %3525 = vpow2.f32 %v2883_v43  ;;  %v900_v48 = vadd.f32 %v844_v46, %v242_v44  ;;  %v2885_v54 = vmul.f32 -1.442695, %v913_v2  ;;  %v928_v33 = vadd.f32 %v3918_v51, %v886_v47  ;;  %v4001_v43 = vld [vmem:[#allocation4 + $0x78] ss:$12 sps:$4 sm:$0xff]   ;;  %v3428_v44 = vld [vmem:[#allocation4 + $0x80] ss:$12 sps:$4 sm:$0xff]  }
 0x1f6   :  { %v3236_v49 = vpop.f32.mrf.mxu1  ;;  %v846_v63 = vpop.f32.mrf.mxu0  ;;  %v4008_v46 = vld [vmem:[#allocation4 + $0x60] ss:$12 sps:$4 sm:$0xff]   ;;  %v3432_v47 = vld [vmem:[#allocation4 + $0x68] ss:$12 sps:$4 sm:$0xff]  }
 0x1f7   :  { %v2884_v56 = vmul.f32 -1.442695, %v900_v48  ;;  %v914_v15 = vadd.f32 %v846_v63, %v243_v52  ;;  %v4011_v48 = vld [vmem:[#allocation4 + $0x4c] ss:$12 sps:$4 sm:$0xff]   ;;  %v4014_v49 = vld [vmem:[#allocation4 + $0x48] ss:$12 sps:$4 sm:$0xff]  }
 0x1f8   :  { %v4021_v63 = vld [vmem:[#allocation4 + $0x30] ss:$12 sps:$4 sm:$0xff]   ;;  %v3440_v52 = vld [vmem:[#allocation4 + $0x38] ss:$12 sps:$4 sm:$0xff]  }
 0x1f9   :  { %3527 = vpow2.f32 %v2884_v56  ;;  %v2886_v16 = vmul.f32 -1.442695, %v914_v15  ;;  %v4018_v56 = vld [vmem:[#allocation4 + $0x34] ss:$12 sps:$4 sm:$0xff]   ;;  %v4025_v2 = vld [vmem:[#allocation4 + $0x1c] ss:$12 sps:$4 sm:$0xff]  }
 0x1fa   :  { %3529 = vpow2.f32 %v2885_v54  ;;  %v4028_v15 = vld [vmem:[#allocation4 + $0x18] ss:$12 sps:$4 sm:$0xff]   ;;  %v3444_v54 = vld [vmem:[#allocation4 + $0x20] ss:$12 sps:$4 sm:$0xff]  }
 0x1fb   :  { %3531 = vpow2.f32 %v2886_v16  ;;  %v4032_v16 = vld [vmem:[#allocation4 + $0x4] ss:$12 sps:$4 sm:$0xff]  }
 0x202   :  { %v3526_v55 = vpop.eup %3525 }
 0x203   :  { %v907_v19 = vadd.f32 1.0, %v3526_v55  ;;  %v4035_v55 = vld [vmem:[#allocation4] ss:$12 sps:$4 sm:$0xff]  }
 0x205   :  { %3533 = vrcp.f32 %v907_v19  ;;  %v3448_v19 = vld [vmem:[#allocation4 + $0x8] ss:$12 sps:$4 sm:$0xff]  }
 0x206   :  { %v3528_v20 = vpop.eup %3527 }
 0x207   :  { %v908_v23 = vadd.f32 1.0, %v3528_v20  ;;  %v3530_v24 = vpop.eup %3529  ;;  %v83_v20 = vpop.permute.xlu0 %82 }
 0x208   :  { %v3532_v58 = vpop.eup %3531  ;;  %v921_v26 = vadd.f32 1.0, %v3530_v24  ;;  %v88_v24 = vpop.permute.xlu1 %87  ;;  %v181_v31 = vmul.f32 %v3903_v12, %v83_v20 }
 0x209   :  { %3535 = vrcp.f32 %v908_v23  ;;  %v922_v29 = vadd.f32 1.0, %v3532_v58  ;;  %v180_v23 = vmul.f32 %v3894_v57, %v83_v20  ;;  %v183_v58 = vmul.f32 %v3894_v57, %v88_v24 }
 0x20a   :  { %3537 = vrcp.f32 %v921_v26 }
 0x20b   :  { %3539 = vrcp.f32 %v922_v29  ;;  %v245_v59 = vadd.f32 %v3900_v62, %v180_v23 }
 0x212   :  { %v3534_v28 = vpop.eup %3533 }
 0x213   :  { %v929_v32 = vmul.f32 %v3534_v28, %v927_v60 }
 0x215   :  { %v931_v9 = vadd.f32 %v929_v32, %v241_v30 }
 0x216   :  { %v3536_v34 = vpop.eup %3535 }
 0x217   :  { %3541 = vtanh.f32 %v931_v9  ;;  %v930_v38 = vmul.f32 %v3536_v34, %v928_v33  ;;  %v3538_v4 = vpop.eup %3537  ;;  %v248_v9 = vadd.f32 %v3900_v62, %v183_v58  ;;  %v184_v33 = vmul.f32 %v3903_v12, %v88_v24 }
 0x218   :  { %v3540_v5 = vpop.eup %3539  ;;  %v935_v7 = vsub.f32 1.0, %v3538_v4  ;;  %v939_v14 = vmul.f32 %v3538_v4, %v3928_v36  ;;  %v3987_v36 = vld [vmem:[#allocation4 + $0xa8] ss:$12 sps:$4 sm:$0xff]   ;;  %v246_v4 = vadd.f32 %v3907_v27, %v181_v31  ;;  %v185_v58 = vmul.f32 %v3913_v50, %v88_v24 }
 0x219   :  { %v932_v3 = vadd.f32 %v930_v38, %v244_v35  ;;  %v936_v8 = vsub.f32 1.0, %v3540_v5  ;;  %v940_v17 = vmul.f32 %v3540_v5, %v3930_v37  ;;  %v3420_v37 = vld [vmem:[#allocation4 + $0xb0] ss:$12 sps:$4 sm:$0xff]  }
 0x21b   :  { %3543 = vtanh.f32 %v932_v3 }
 0x224   :  { %v3542_v6 = vpop.eup %3541 }
 0x225   :  { %v937_v10 = vmul.f32 %v3542_v6, %v935_v7  ;;  %v249_v7 = vadd.f32 %v3907_v27, %v184_v33 }
 0x227   :  { %v3976_v18 = vadd.f32 %v939_v14, %v937_v10 }
 0x228   :  { %v3544_v11 = vpop.eup %3543 }
 0x229   :  { %v938_v13 = vmul.f32 %v3544_v11, %v936_v8 }
 0x22b   :  { %v3978_v21 = vadd.f32 %v940_v17, %v938_v13 }
 0x22d   :  { %v943_v22 = vpack.c.bf16 %v3978_v21, %v3976_v18 }
 0x22f   :  { %3094 = vst [vmem:[#allocation7 + $0x8] sm:$0xff] %v943_v22   ;;  %1147 = vmatmul.mubr.bf16.vlgmr.msra.gmra.mxu0 %v943_v22  ;;  %3254 = vmatmul.mubr.bf16.vlgmr.msra.gmra.mxu1 %v943_v22 }
 0x230   :  { %1454 = vmatprep.mubr.bf16.mxu0 %v3714_v1  ;;  %3273 = vmatprep.mubr.msk.bf16.mxu1 %vm3715_vm0, %v3713_v0 }
 0x231   :  { %1423 = vmatpush1.bf16.msra.mxu0 %v3987_v36  ;;  %3258 = vmatpush3.bf16.msra.mxu1 %v3420_v37 }
 0x232   :  { %3259 = vmatprep.subr.bf16.mxu1 %v3713_v0  ;;  %1424 = vmatprep.subr.bf16.mxu0 %v3991_v39 }
 0x235   :  { %1425 = vmatpush1.bf16.msra.mxu0 %v3994_v40  ;;  %3260 = vmatpush3.bf16.msra.mxu1 %v3424_v41 }
 0x236   :  { %3261 = vmatprep.subr.bf16.mxu1 %v3713_v0  ;;  %1426 = vmatprep.subr.bf16.mxu0 %v3998_v42 }
 0x239   :  { %1427 = vmatpush1.bf16.msra.mxu0 %v4001_v43  ;;  %3262 = vmatpush3.bf16.msra.mxu1 %v3428_v44 }
 0x23a   :  { %3263 = vmatprep.subr.bf16.mxu1 %v3713_v0  ;;  %1428 = vmatprep.subr.bf16.mxu0 %v4005_v45 }
 0x23d   :  { %1429 = vmatpush1.bf16.msra.mxu0 %v4008_v46  ;;  %3264 = vmatpush3.bf16.msra.mxu1 %v3432_v47  ;;  %v182_v47 = vmul.f32 %v3913_v50, %v83_v20 }
 0x23e   :  { %1430 = vmatprep.subr.bf16.mxu0 %v4011_v48  ;;  %3265 = vmatprep.subr.bf16.mxu1 %v3713_v0 }
 0x23f   :  { %v247_v23 = vadd.f32 %v3920_v61, %v182_v47 }
 0x241   :  { %1431 = vmatpush1.bf16.msra.mxu0 %v4014_v49  ;;  %3266 = vmatpush3.bf16.msra.mxu1 %v3436_v53 }
 0x242   :  { %1432 = vmatprep.subr.bf16.mxu0 %v4018_v56  ;;  %3267 = vmatprep.subr.bf16.mxu1 %v3713_v0 }
 0x245   :  { %1433 = vmatpush1.bf16.msra.mxu0 %v4021_v63  ;;  %3268 = vmatpush3.bf16.msra.mxu1 %v3440_v52 }
 0x246   :  { %1434 = vmatprep.subr.bf16.mxu0 %v4025_v2  ;;  %3269 = vmatprep.subr.bf16.mxu1 %v3713_v0 }
 0x249   :  { %1435 = vmatpush1.bf16.msra.mxu0 %v4028_v15  ;;  %3270 = vmatpush3.bf16.msra.mxu1 %v3444_v54 }
 0x24a   :  { %1436 = vmatprep.subr.bf16.mxu0 %v4032_v16  ;;  %3271 = vmatprep.subr.bf16.mxu1 %v3713_v0 }
 0x24d   :  { %1437 = vmatpush1.bf16.msra.mxu0 %v4035_v55  ;;  %3272 = vmatpush3.bf16.msra.mxu1 %v3448_v19 }
 0x24e   :  { %1730 = vmatprep.subr.bf16.mxu0 %v3985_v25  ;;  %3277 = vmatprep.subr.bf16.mxu1 %v3713_v0 }
 0x2ef   :  { %v1148_v60 = vpop.f32.mrf.mxu0  ;;  %v1191_v26 = vpop.f32.mrf.mxu1 }
 0x2f0   :  { %v1207_v28 = vadd.f32 %v1148_v60, %v245_v59  ;;  %v1235_v53 = vadd.f32 %v3918_v51, %v1191_v26 }
 0x2f1   :  { %v1150_v29 = vpop.f32.mrf.mxu0  ;;  %v3255_v30 = vpop.f32.mrf.mxu1 }
 0x2f2   :  { %v2913_v32 = vmul.f32 -1.442695, %v1207_v28  ;;  %v1221_v8 = vadd.f32 %v1150_v29, %v246_v4  ;;  %v250_v30 = vadd.f32 %v3920_v61, %v185_v58 }
 0x2f3   :  { %v1152_v34 = vpop.f32.mrf.mxu0  ;;  %v1194_v35 = vpop.f32.mrf.mxu1 }
 0x2f4   :  { %3545 = vpow2.f32 %v2913_v32  ;;  %v1208_v38 = vadd.f32 %v1152_v34, %v248_v9  ;;  %v2915_v11 = vmul.f32 -1.442695, %v1221_v8  ;;  %v1236_v28 = vadd.f32 %v3918_v51, %v1194_v35  ;;  %v3451_v8 = vld [vmem:[#allocation4 + $0x80] ss:$12 sps:$4 sm:$0xff]  }
 0x2f5   :  { %v3256_v3 = vpop.f32.mrf.mxu1  ;;  %v1154_v6 = vpop.f32.mrf.mxu0 }
 0x2f6   :  { %v2914_v5 = vmul.f32 -1.442695, %v1208_v38  ;;  %v1222_v10 = vadd.f32 %v1154_v6, %v249_v7 }
 0x2f8   :  { %3547 = vpow2.f32 %v2914_v5  ;;  %v2916_v13 = vmul.f32 -1.442695, %v1222_v10  ;;  %v3452_v10 = vld [vmem:[#allocation4 + $0x68] ss:$12 sps:$4 sm:$0xff]  }
 0x2f9   :  { %3549 = vpow2.f32 %v2915_v11  ;;  %v3453_v11 = vld [vmem:[#allocation4 + $0x50] ss:$12 sps:$4 sm:$0xff]  }
 0x2fa   :  { %3551 = vpow2.f32 %v2916_v13  ;;  %v3454_v13 = vld [vmem:[#allocation4 + $0x38] ss:$12 sps:$4 sm:$0xff]  }
 0x301   :  { %v3546_v14 = vpop.eup %3545 }
 0x302   :  { %v1215_v17 = vadd.f32 1.0, %v3546_v14  ;;  %v3455_v14 = vld [vmem:[#allocation4 + $0x20] ss:$12 sps:$4 sm:$0xff]  }
 0x304   :  { %3553 = vrcp.f32 %v1215_v17  ;;  %v3456_v17 = vld [vmem:[#allocation4 + $0x8] ss:$12 sps:$4 sm:$0xff]  }
 0x305   :  { %v3548_v22 = vpop.eup %3547 }
 0x306   :  { %v1216_v37 = vadd.f32 1.0, %v3548_v22  ;;  %v3550_v41 = vpop.eup %3549  ;;  %v93_v22 = vpop.permute.xlu0 %92 }
 0x307   :  { %v3552_v44 = vpop.eup %3551  ;;  %v1229_v52 = vadd.f32 1.0, %v3550_v41  ;;  %v98_v41 = vpop.permute.xlu1 %97  ;;  %v187_v58 = vmul.f32 %v3903_v12, %v93_v22 }
 0x308   :  { %3555 = vrcp.f32 %v1216_v37  ;;  %v1230_v19 = vadd.f32 1.0, %v3552_v44  ;;  %v186_v37 = vmul.f32 %v3894_v57, %v93_v22  ;;  %v189_v44 = vmul.f32 %v3894_v57, %v98_v41 }
 0x309   :  { %3557 = vrcp.f32 %v1229_v52 }
 0x30a   :  { %3559 = vrcp.f32 %v1230_v19  ;;  %v251_v47 = vadd.f32 %v3900_v62, %v186_v37 }
 0x311   :  { %v3554_v54 = vpop.eup %3553 }
 0x312   :  { %v1237_v59 = vmul.f32 %v3554_v54, %v1235_v53 }
 0x314   :  { %v1239_v60 = vadd.f32 %v1237_v59, %v247_v23 }
 0x315   :  { %v3556_v29 = vpop.eup %3555 }
 0x316   :  { %3561 = vtanh.f32 %v1239_v60  ;;  %v1238_v20 = vmul.f32 %v3556_v29, %v1236_v28  ;;  %v3558_v26 = vpop.eup %3557  ;;  %v254_v60 = vadd.f32 %v3900_v62, %v189_v44  ;;  %v190_v28 = vmul.f32 %v3903_v12, %v98_v41 }
 0x317   :  { %v3560_v32 = vpop.eup %3559  ;;  %v1243_v33 = vsub.f32 1.0, %v3558_v26  ;;  %v1247_v4 = vmul.f32 %v3558_v26, %v3976_v18  ;;  %v3449_v18 = vld [vmem:[#allocation4 + $0xb0] ss:$12 sps:$4 sm:$0xff]   ;;  %v252_v26 = vadd.f32 %v3907_v27, %v187_v58  ;;  %v191_v44 = vmul.f32 %v3913_v50, %v98_v41 }
 0x318   :  { %v1240_v31 = vadd.f32 %v1238_v20, %v250_v30  ;;  %v1244_v34 = vsub.f32 1.0, %v3560_v32  ;;  %v1248_v35 = vmul.f32 %v3560_v32, %v3978_v21  ;;  %v3450_v21 = vld [vmem:[#allocation4 + $0x98] ss:$12 sps:$4 sm:$0xff]  }
 0x31a   :  { %3563 = vtanh.f32 %v1240_v31 }
 0x323   :  { %v3562_v9 = vpop.eup %3561 }
 0x324   :  { %v1245_v38 = vmul.f32 %v3562_v9, %v1243_v33  ;;  %v255_v33 = vadd.f32 %v3907_v27, %v190_v28 }
 0x326   :  { %v4058_v5 = vadd.f32 %v1247_v4, %v1245_v38 }
 0x327   :  { %v3564_v24 = vpop.eup %3563 }
 0x328   :  { %v1246_v3 = vmul.f32 %v3564_v24, %v1244_v34 }
 0x32a   :  { %v4060_v6 = vadd.f32 %v1248_v35, %v1246_v3 }
 0x32c   :  { %v1251_v7 = vpack.c.bf16 %v4060_v6, %v4058_v5 }
 0x32e   :  { %3099 = vst [vmem:[#allocation7 + $0x10] sm:$0xff] %v1251_v7   ;;  %1455 = vmatmul.mubr.bf16.vlgmr.msra.gmra.mxu0 %v1251_v7  ;;  %3274 = vmatmul.mubr.bf16.vlgmr.msra.gmra.mxu1 %v1251_v7 }
 0x32f   :  { %1731 = vmatpush1.bf16.msra.mxu0 %v3987_v36  ;;  %1762 = vmatprep.mubr.bf16.mxu0 %v3714_v1 }
 0x330   :  { %1732 = vmatprep.subr.bf16.mxu0 %v3991_v39  ;;  %3293 = vmatprep.mubr.msk.bf16.mxu1 %vm3715_vm0, %v3713_v0 }
 0x331   :  { %3278 = vmatpush3.bf16.msra.mxu1 %v3449_v18 }
 0x332   :  { %3279 = vmatprep.subr.bf16.mxu1 %v3713_v0 }
 0x333   :  { %1733 = vmatpush1.bf16.msra.mxu0 %v3994_v40 }
 0x334   :  { %1734 = vmatprep.subr.bf16.mxu0 %v3998_v42 }
 0x335   :  { %3280 = vmatpush3.bf16.msra.mxu1 %v3450_v21 }
 0x336   :  { %3281 = vmatprep.subr.bf16.mxu1 %v3713_v0 }
 0x337   :  { %1735 = vmatpush1.bf16.msra.mxu0 %v4001_v43 }
 0x338   :  { %1736 = vmatprep.subr.bf16.mxu0 %v4005_v45 }
 0x339   :  { %3282 = vmatpush3.bf16.msra.mxu1 %v3451_v8 }
 0x33a   :  { %3283 = vmatprep.subr.bf16.mxu1 %v3713_v0 }
 0x33b   :  { %1737 = vmatpush1.bf16.msra.mxu0 %v4008_v46 }
 0x33c   :  { %1738 = vmatprep.subr.bf16.mxu0 %v4011_v48 }
 0x33d   :  { %3284 = vmatpush3.bf16.msra.mxu1 %v3452_v10  ;;  %v188_v10 = vmul.f32 %v3913_v50, %v93_v22 }
 0x33e   :  { %3285 = vmatprep.subr.bf16.mxu1 %v3713_v0 }
 0x33f   :  { %1739 = vmatpush1.bf16.msra.mxu0 %v4014_v49  ;;  %v253_v37 = vadd.f32 %v3920_v61, %v188_v10 }
 0x340   :  { %1740 = vmatprep.subr.bf16.mxu0 %v4018_v56 }
 0x341   :  { %3286 = vmatpush3.bf16.msra.mxu1 %v3453_v11 }
 0x342   :  { %3287 = vmatprep.subr.bf16.mxu1 %v3713_v0 }
 0x343   :  { %1741 = vmatpush1.bf16.msra.mxu0 %v4021_v63 }
 0x344   :  { %1742 = vmatprep.subr.bf16.mxu0 %v4025_v2 }
 0x345   :  { %3288 = vmatpush3.bf16.msra.mxu1 %v3454_v13 }
 0x346   :  { %3289 = vmatprep.subr.bf16.mxu1 %v3713_v0 }
 0x347   :  { %1743 = vmatpush1.bf16.msra.mxu0 %v4028_v15 }
 0x348   :  { %1744 = vmatprep.subr.bf16.mxu0 %v4032_v16 }
 0x349   :  { %3290 = vmatpush3.bf16.msra.mxu1 %v3455_v14 }
 0x34a   :  { %3291 = vmatprep.subr.bf16.mxu1 %v3713_v0 }
 0x34b   :  { %1745 = vmatpush1.bf16.msra.mxu0 %v4035_v55 }
 0x34c   :  { %2038 = vmatprep.subr.bf16.mxu0 %v3985_v25 }
 0x34d   :  { %3292 = vmatpush3.bf16.msra.mxu1 %v3456_v17 }
 0x34e   :  { %3297 = vmatprep.subr.bf16.mxu1 %v3713_v0 }
 0x3ee   :  { %v1456_v53 = vpop.f32.mrf.mxu0  ;;  %v1499_v52 = vpop.f32.mrf.mxu1 }
 0x3ef   :  { %v1515_v54 = vadd.f32 %v1456_v53, %v251_v47  ;;  %v1543_v11 = vadd.f32 %v3918_v51, %v1499_v52 }
 0x3f0   :  { %v1458_v19 = vpop.f32.mrf.mxu0  ;;  %v3275_v23 = vpop.f32.mrf.mxu1 }
 0x3f1   :  { %v2943_v59 = vmul.f32 -1.442695, %v1515_v54  ;;  %v1529_v34 = vadd.f32 %v1458_v19, %v252_v26  ;;  %v256_v23 = vadd.f32 %v3920_v61, %v191_v44 }
 0x3f2   :  { %v1460_v29 = vpop.f32.mrf.mxu0  ;;  %v1502_v30 = vpop.f32.mrf.mxu1 }
 0x3f3   :  { %3565 = vpow2.f32 %v2943_v59  ;;  %v1516_v20 = vadd.f32 %v1460_v29, %v254_v60  ;;  %v2945_v24 = vmul.f32 -1.442695, %v1529_v34  ;;  %v1544_v54 = vadd.f32 %v3918_v51, %v1502_v30  ;;  %v3459_v34 = vld [vmem:[#allocation4 + $0x80] ss:$12 sps:$4 sm:$0xff]  }
 0x3f4   :  { %v3276_v31 = vpop.f32.mrf.mxu1  ;;  %v1462_v9 = vpop.f32.mrf.mxu0 }
 0x3f5   :  { %v2944_v32 = vmul.f32 -1.442695, %v1516_v20  ;;  %v1530_v38 = vadd.f32 %v1462_v9, %v255_v33 }
 0x3f7   :  { %3567 = vpow2.f32 %v2944_v32  ;;  %v2946_v3 = vmul.f32 -1.442695, %v1530_v38  ;;  %v3460_v38 = vld [vmem:[#allocation4 + $0x68] ss:$12 sps:$4 sm:$0xff]  }
 0x3f8   :  { %3569 = vpow2.f32 %v2945_v24  ;;  %v3461_v24 = vld [vmem:[#allocation4 + $0x50] ss:$12 sps:$4 sm:$0xff]  }
 0x3f9   :  { %3571 = vpow2.f32 %v2946_v3  ;;  %v3462_v3 = vld [vmem:[#allocation4 + $0x38] ss:$12 sps:$4 sm:$0xff]  }
 0x400   :  { %v3566_v4 = vpop.eup %3565 }
 0x401   :  { %v1523_v35 = vadd.f32 1.0, %v3566_v4  ;;  %v3464_v4 = vld [vmem:[#allocation4 + $0x8] ss:$12 sps:$4 sm:$0xff]  }
 0x403   :  { %3573 = vrcp.f32 %v1523_v35  ;;  %v103_v35 = vpop.permute.xlu0 %102 }
 0x404   :  { %v3568_v7 = vpop.eup %3567 }
 0x405   :  { %v1524_v18 = vadd.f32 1.0, %v3568_v7  ;;  %v3570_v21 = vpop.eup %3569  ;;  %v192_v7 = vmul.f32 %v3894_v57, %v103_v35 }
 0x406   :  { %v3572_v8 = vpop.eup %3571  ;;  %v1537_v13 = vadd.f32 1.0, %v3570_v21 }
 0x407   :  { %3575 = vrcp.f32 %v1524_v18  ;;  %v1538_v17 = vadd.f32 1.0, %v3572_v8  ;;  %v108_v18 = vpop.permute.xlu1 %107  ;;  %v257_v8 = vadd.f32 %v3900_v62, %v192_v7 }
 0x408   :  { %3577 = vrcp.f32 %v1537_v13  ;;  %v195_v21 = vmul.f32 %v3894_v57, %v108_v18  ;;  %v197_v7 = vmul.f32 %v3913_v50, %v108_v18 }
 0x409   :  { %3579 = vrcp.f32 %v1538_v17 }
 0x410   :  { %v3574_v14 = vpop.eup %3573 }
 0x411   :  { %v1545_v47 = vmul.f32 %v3574_v14, %v1543_v11 }
 0x413   :  { %v1547_v53 = vadd.f32 %v1545_v47, %v253_v37  ;;  %v193_v37 = vmul.f32 %v3903_v12, %v103_v35  ;;  %v260_v47 = vadd.f32 %v3900_v62, %v195_v21 }
 0x414   :  { %v3576_v19 = vpop.eup %3575 }
 0x415   :  { %3581 = vtanh.f32 %v1547_v53  ;;  %v1546_v22 = vmul.f32 %v3576_v19, %v1544_v54  ;;  %v3578_v52 = vpop.eup %3577  ;;  %v196_v53 = vmul.f32 %v3903_v12, %v108_v18 }
 0x416   :  { %v3580_v59 = vpop.eup %3579  ;;  %v1551_v28 = vsub.f32 1.0, %v3578_v52  ;;  %v1555_v26 = vmul.f32 %v3578_v52, %v4058_v5  ;;  %v3457_v5 = vld [vmem:[#allocation4 + $0xb0] ss:$12 sps:$4 sm:$0xff]  }
 0x417   :  { %v1548_v58 = vadd.f32 %v1546_v22, %v256_v23  ;;  %v1552_v29 = vsub.f32 1.0, %v3580_v59  ;;  %v1556_v30 = vmul.f32 %v3580_v59, %v4060_v6  ;;  %v3458_v6 = vld [vmem:[#allocation4 + $0x98] ss:$12 sps:$4 sm:$0xff]  }
 0x419   :  { %3583 = vtanh.f32 %v1548_v58  ;;  %v258_v58 = vadd.f32 %v3907_v27, %v193_v37 }
 0x422   :  { %v3582_v60 = vpop.eup %3581 }
 0x423   :  { %v1553_v20 = vmul.f32 %v3582_v60, %v1551_v28  ;;  %v261_v60 = vadd.f32 %v3907_v27, %v196_v53 }
 0x425   :  { %v4107_v32 = vadd.f32 %v1555_v26, %v1553_v20 }
 0x426   :  { %v3584_v41 = vpop.eup %3583 }
 0x427   :  { %v1554_v31 = vmul.f32 %v3584_v41, %v1552_v29 }
 0x429   :  { %v4109_v9 = vadd.f32 %v1556_v30, %v1554_v31 }
 0x42b   :  { %v1559_v33 = vpack.c.bf16 %v4109_v9, %v4107_v32 }
 0x42d   :  { %3104 = vst [vmem:[#allocation7 + $0x18] sm:$0xff] %v1559_v33   ;;  %1763 = vmatmul.mubr.bf16.vlgmr.msra.gmra.mxu0 %v1559_v33  ;;  %3294 = vmatmul.mubr.bf16.vlgmr.msra.gmra.mxu1 %v1559_v33 }
 0x42e   :  { %2039 = vmatpush1.bf16.msra.mxu0 %v3987_v36  ;;  %2070 = vmatprep.mubr.bf16.mxu0 %v3714_v1 }
 0x42f   :  { %2040 = vmatprep.subr.bf16.mxu0 %v3991_v39  ;;  %3313 = vmatprep.mubr.msk.bf16.mxu1 %vm3715_vm0, %v3713_v0 }
 0x430   :  { %3298 = vmatpush3.bf16.msra.mxu1 %v3457_v5 }
 0x431   :  { %3299 = vmatprep.subr.bf16.mxu1 %v3713_v0 }
 0x432   :  { %2041 = vmatpush1.bf16.msra.mxu0 %v3994_v40 }
 0x433   :  { %2042 = vmatprep.subr.bf16.mxu0 %v3998_v42 }
 0x434   :  { %3300 = vmatpush3.bf16.msra.mxu1 %v3458_v6 }
 0x435   :  { %3301 = vmatprep.subr.bf16.mxu1 %v3713_v0 }
 0x436   :  { %2043 = vmatpush1.bf16.msra.mxu0 %v4001_v43 }
 0x437   :  { %2044 = vmatprep.subr.bf16.mxu0 %v4005_v45 }
 0x438   :  { %3302 = vmatpush3.bf16.msra.mxu1 %v3459_v34  ;;  %v194_v34 = vmul.f32 %v3913_v50, %v103_v35 }
 0x439   :  { %3303 = vmatprep.subr.bf16.mxu1 %v3713_v0 }
 0x43a   :  { %2045 = vmatpush1.bf16.msra.mxu0 %v4008_v46 }
 0x43b   :  { %2046 = vmatprep.subr.bf16.mxu0 %v4011_v48 }
 0x43c   :  { %3304 = vmatpush3.bf16.msra.mxu1 %v3460_v38 }
 0x43d   :  { %3305 = vmatprep.subr.bf16.mxu1 %v3713_v0 }
 0x43e   :  { %2047 = vmatpush1.bf16.msra.mxu0 %v4014_v49 }
 0x43f   :  { %2048 = vmatprep.subr.bf16.mxu0 %v4018_v56 }
 0x440   :  { %3306 = vmatpush3.bf16.msra.mxu1 %v3461_v24 }
 0x441   :  { %3307 = vmatprep.subr.bf16.mxu1 %v3713_v0 }
 0x442   :  { %2049 = vmatpush1.bf16.msra.mxu0 %v4021_v63 }
 0x443   :  { %2050 = vmatprep.subr.bf16.mxu0 %v4025_v2 }
 0x444   :  { %3308 = vmatpush3.bf16.msra.mxu1 %v3462_v3 }
 0x445   :  { %3309 = vmatprep.subr.bf16.mxu1 %v3713_v0 }
 0x446   :  { %2051 = vmatpush1.bf16.msra.mxu0 %v4028_v15 }
 0x447   :  { %2052 = vmatprep.subr.bf16.mxu0 %v4032_v16 }
 0x44a   :  { %2053 = vmatpush1.bf16.msra.mxu0 %v4035_v55 }
 0x44b   :  { %2346 = vmatprep.subr.bf16.mxu0 %v3985_v25  ;;  %v3463_v25 = vld [vmem:[#allocation4 + $0x20] ss:$12 sps:$4 sm:$0xff]  }
 0x44c   :  { %3310 = vmatpush3.bf16.msra.mxu1 %v3463_v25 }
 0x44d   :  { %3311 = vmatprep.subr.bf16.mxu1 %v3713_v0 }
 0x450   :  { %3312 = vmatpush3.bf16.msra.mxu1 %v3464_v4  ;;  %v259_v4 = vadd.f32 %v3920_v61, %v194_v34 }
 0x451   :  { %3317 = vmatprep.subr.bf16.mxu1 %v3713_v0 }
 0x4ed   :  { %v1764_v10 = vpop.f32.mrf.mxu0  ;;  %v1807_v11 = vpop.f32.mrf.mxu1 }
 0x4ee   :  { %v1823_v13 = vadd.f32 %v1764_v10, %v257_v8  ;;  %v1851_v38 = vadd.f32 %v3918_v51, %v1807_v11 }
 0x4ef   :  { %v1766_v14 = vpop.f32.mrf.mxu0  ;;  %v3295_v17 = vpop.f32.mrf.mxu1 }
 0x4f0   :  { %v2973_v44 = vmul.f32 -1.442695, %v1823_v13  ;;  %v1837_v28 = vadd.f32 %v1766_v14, %v258_v58  ;;  %v262_v14 = vadd.f32 %v3920_v61, %v197_v7 }
 0x4f1   :  { %v1768_v54 = vpop.f32.mrf.mxu0  ;;  %v1810_v19 = vpop.f32.mrf.mxu1 }
 0x4f2   :  { %3585 = vpow2.f32 %v2973_v44  ;;  %v1824_v23 = vadd.f32 %v1768_v54, %v260_v47  ;;  %v2975_v20 = vmul.f32 -1.442695, %v1837_v28  ;;  %v1852_v10 = vadd.f32 %v3918_v51, %v1810_v19 }
 0x4f3   :  { %v3296_v22 = vpop.f32.mrf.mxu1  ;;  %v1770_v59 = vpop.f32.mrf.mxu0 }
 0x4f4   :  { %v2974_v52 = vmul.f32 -1.442695, %v1824_v23  ;;  %v1838_v29 = vadd.f32 %v1770_v59, %v261_v60 }
 0x4f6   :  { %3587 = vpow2.f32 %v2974_v52  ;;  %v2976_v41 = vmul.f32 -1.442695, %v1838_v29 }
 0x4f7   :  { %3589 = vpow2.f32 %v2975_v20 }
 0x4f8   :  { %3591 = vpow2.f32 %v2976_v41 }
 0x4ff   :  { %v3586_v31 = vpop.eup %3585 }
 0x500   :  { %v1831_v26 = vadd.f32 1.0, %v3586_v31 }
 0x502   :  { %3593 = vrcp.f32 %v1831_v26 }
 0x503   :  { %v3588_v30 = vpop.eup %3587 }
 0x504   :  { %v1832_v33 = vadd.f32 1.0, %v3588_v30  ;;  %v3590_v5 = vpop.eup %3589 }
 0x505   :  { %v3592_v6 = vpop.eup %3591  ;;  %v1845_v24 = vadd.f32 1.0, %v3590_v5 }
 0x506   :  { %3595 = vrcp.f32 %v1832_v33  ;;  %v1846_v25 = vadd.f32 1.0, %v3592_v6 }
 0x507   :  { %3597 = vrcp.f32 %v1845_v24 }
 0x508   :  { %3599 = vrcp.f32 %v1846_v25 }
 0x50f   :  { %v3594_v3 = vpop.eup %3593 }
 0x510   :  { %v1853_v21 = vmul.f32 %v3594_v3, %v1851_v38 }
 0x512   :  { %v1855_v8 = vadd.f32 %v1853_v21, %v259_v4 }
 0x513   :  { %v3596_v13 = vpop.eup %3595 }
 0x514   :  { %3601 = vtanh.f32 %v1855_v8  ;;  %v1854_v35 = vmul.f32 %v3596_v13, %v1852_v10  ;;  %v3598_v11 = vpop.eup %3597 }
 0x515   :  { %v3600_v37 = vpop.eup %3599  ;;  %v1859_v47 = vsub.f32 1.0, %v3598_v11  ;;  %v1863_v22 = vmul.f32 %v3598_v11, %v4107_v32 }
 0x516   :  { %v1856_v17 = vadd.f32 %v1854_v35, %v262_v14  ;;  %v1860_v53 = vsub.f32 1.0, %v3600_v37  ;;  %v1864_v51 = vmul.f32 %v3600_v37, %v4109_v9  ;;  %v4200_v35 = vld [vmem:[%s4270_s4] ss:$0 sm:$0xff]  ;;  %s3717_s4 = smov [#allocation7]  }
 0x517   :  { %s2809_s10 = sshll.u32 %s3717_s4, 4  ;;  %s2810_s10 = int_to_ptr.vmem [resolvable:$true] %s2809_s10 }
 0x518   :  { %3603 = vtanh.f32 %v1856_v17  ;;  %s3686_s11 = scalar_lea.vmem %s2810_s10, 1024  ;;  %p3691_p6 = scmp.lt.s32.totalorder %s2810_s10, %s2810_s10 }
 0x519   :  { %p3687_p5 = scmp.ne.s32.totalorder %s2810_s10, %s3686_s11  ;;  %p3692_p7 = scmp.lt.s32.totalorder %s3686_s11, %s3686_s11 }
 0x51b   :  { %p3693_p8 = por %p3692_p7, %p3691_p6 }
 0x51d   :  { %p3694_p9 = pnand %p3693_p8, %p3687_p5 }
 0x521   :  { %v3602_v44 = vpop.eup %3601 }
 0x522   :  { %v1861_v54 = vmul.f32 %v3602_v44, %v1859_v47 }
 0x524   :  { %v4156_v19 = vadd.f32 %v1863_v22, %v1861_v54 }
 0x525   :  { %v3604_v18 = vpop.eup %3603 }
 0x526   :  { %v1862_v23 = vmul.f32 %v3604_v18, %v1860_v53 }
 0x528   :  { %v4158_v58 = vadd.f32 %v1864_v51, %v1862_v23 }
 0x52a   :  { %v1867_v52 = vpack.c.bf16 %v4158_v58, %v4156_v19 }
 0x52c   :  { %3109 = vst [vmem:[#allocation7 + $0x20] sm:$0xff] %v1867_v52   ;;  %2071 = vmatmul.mubr.bf16.vlgmr.msra.gmra.mxu0 %v1867_v52  ;;  %3314 = vmatmul.mubr.bf16.vlgmr.msra.gmra.mxu1 %v1867_v52 }
 0x52d   :  { %2347 = vmatpush1.bf16.msra.mxu0 %v3987_v36  ;;  %2378 = vmatprep.mubr.bf16.mxu0 %v3714_v1  ;;  %v3465_v36 = vld [vmem:[#allocation4 + $0xb0] ss:$12 sps:$4 sm:$0xff]  }
 0x52e   :  { %2348 = vmatprep.subr.bf16.mxu0 %v3991_v39  ;;  %3333 = vmatprep.mubr.msk.bf16.mxu1 %vm3715_vm0, %v3713_v0  ;;  %v3466_v39 = vld [vmem:[#allocation4 + $0x98] ss:$12 sps:$4 sm:$0xff]  }
 0x52f   :  { %3318 = vmatpush3.bf16.msra.mxu1 %v3465_v36 }
 0x530   :  { %3319 = vmatprep.subr.bf16.mxu1 %v3713_v0 }
 0x531   :  { %2349 = vmatpush1.bf16.msra.mxu0 %v3994_v40  ;;  %v3467_v40 = vld [vmem:[#allocation4 + $0x80] ss:$12 sps:$4 sm:$0xff]  }
 0x532   :  { %2350 = vmatprep.subr.bf16.mxu0 %v3998_v42  ;;  %v3468_v42 = vld [vmem:[#allocation4 + $0x68] ss:$12 sps:$4 sm:$0xff]  }
 0x533   :  { %3320 = vmatpush3.bf16.msra.mxu1 %v3466_v39 }
 0x534   :  { %3321 = vmatprep.subr.bf16.mxu1 %v3713_v0 }
 0x535   :  { %2351 = vmatpush1.bf16.msra.mxu0 %v4001_v43  ;;  %v3469_v43 = vld [vmem:[#allocation4 + $0x50] ss:$12 sps:$4 sm:$0xff]  }
 0x536   :  { %2352 = vmatprep.subr.bf16.mxu0 %v4005_v45  ;;  %v3470_v45 = vld [vmem:[#allocation4 + $0x38] ss:$12 sps:$4 sm:$0xff]  }
 0x537   :  { %3322 = vmatpush3.bf16.msra.mxu1 %v3467_v40 }
 0x538   :  { %3323 = vmatprep.subr.bf16.mxu1 %v3713_v0 }
 0x539   :  { %2353 = vmatpush1.bf16.msra.mxu0 %v4008_v46  ;;  %v3471_v46 = vld [vmem:[#allocation4 + $0x20] ss:$12 sps:$4 sm:$0xff]  }
 0x53a   :  { %2354 = vmatprep.subr.bf16.mxu0 %v4011_v48  ;;  %v3472_v48 = vld [vmem:[#allocation4 + $0x8] ss:$12 sps:$4 sm:$0xff]  }
 0x53b   :  { %3324 = vmatpush3.bf16.msra.mxu1 %v3468_v42 }
 0x53c   :  { %3325 = vmatprep.subr.bf16.mxu1 %v3713_v0 }
 0x53d   :  { %2355 = vmatpush1.bf16.msra.mxu0 %v4014_v49  ;;  %v113_v49 = vpop.permute.xlu0 %112 }
 0x53e   :  { %2356 = vmatprep.subr.bf16.mxu0 %v4018_v56  ;;  %v198_v56 = vmul.f32 %v3894_v57, %v113_v49  ;;  %v199_v60 = vmul.f32 %v3903_v12, %v113_v49  ;;  %v200_v14 = vmul.f32 %v3913_v50, %v113_v49 }
 0x53f   :  { %3326 = vmatpush3.bf16.msra.mxu1 %v3469_v43 }
 0x540   :  { %3327 = vmatprep.subr.bf16.mxu1 %v3713_v0  ;;  %v264_v33 = vadd.f32 %v3907_v27, %v199_v60  ;;  %v265_v47 = vadd.f32 %v3920_v61, %v200_v14  ;;  %v3483_v60 = vld [vmem:[#allocation4 + $0x7c] ss:$12 sps:$4 sm:$0xff]  }
 0x541   :  { %2357 = vmatpush1.bf16.msra.mxu0 %v4021_v63  ;;  %v118_v63 = vpop.permute.xlu1 %117 }
 0x542   :  { %2358 = vmatprep.subr.bf16.mxu0 %v4025_v2  ;;  %v201_v2 = vmul.f32 %v3894_v57, %v118_v63  ;;  %v202_v20 = vmul.f32 %v3903_v12, %v118_v63  ;;  %v203_v53 = vmul.f32 %v3913_v50, %v118_v63 }
 0x543   :  { %3328 = vmatpush3.bf16.msra.mxu1 %v3470_v45 }
 0x544   :  { %3329 = vmatprep.subr.bf16.mxu1 %v3713_v0  ;;  %v266_v29 = vadd.f32 %v3900_v62, %v201_v2  ;;  %v267_v34 = vadd.f32 %v3907_v27, %v202_v20  ;;  %v268_v51 = vadd.f32 %v3920_v61, %v203_v53  ;;  %v3485_v20 = vld [vmem:[#allocation4 + $0x60] ss:$12 sps:$4 sm:$0xff]  }
 0x545   :  { %2359 = vmatpush1.bf16.msra.mxu0 %v4028_v15  ;;  %v263_v15 = vadd.f32 %v3900_v62, %v198_v56 }
 0x546   :  { %2360 = vmatprep.subr.bf16.mxu0 %v4032_v16 }
 0x547   :  { %3330 = vmatpush3.bf16.msra.mxu1 %v3471_v46 }
 0x548   :  { %3331 = vmatprep.subr.bf16.mxu1 %v3713_v0 }
 0x549   :  { %2361 = vmatpush1.bf16.msra.mxu0 %v4035_v55 }
 0x54b   :  { %3332 = vmatpush3.bf16.msra.mxu1 %v3472_v48 }
 0x54c   :  { %3337 = vmatprep.subr.bf16.mxu1 %v3713_v0 }
 0x5ec   :  { %v2072_v16 = vpop.f32.mrf.mxu0  ;;  %v2115_v55 = vpop.f32.mrf.mxu1 }
 0x5ed   :  { %v2131_v32 = vadd.f32 %v2072_v16, %v263_v15  ;;  %v2159_v17 = vadd.f32 %v4200_v35, %v2115_v55  ;;  %v3475_v55 = vld [vmem:[#allocation4 + $0xac] ss:$12 sps:$4 sm:$0xff]  }
 0x5ee   :  { %v2074_v9 = vpop.f32.mrf.mxu0  ;;  %v3315_v59 = vpop.f32.mrf.mxu1  ;;  %2654 = vmatprep.subr.bf16.mxu0 %v3475_v55 }
 0x5ef   :  { %v3003_v28 = vmul.f32 -1.442695, %v2131_v32  ;;  %v2145_v38 = vadd.f32 %v2074_v9, %v264_v33  ;;  %v3473_v32 = vld [vmem:[#allocation4 + $0xa8] ss:$12 sps:$4 sm:$0xff]   ;;  %v3477_v9 = vld [vmem:[#allocation4 + $0x90] ss:$12 sps:$4 sm:$0xff]  }
 0x5f0   :  { %v2076_v41 = vpop.f32.mrf.mxu0  ;;  %v2118_v31 = vpop.f32.mrf.mxu1  ;;  %v3480_v59 = vld [vmem:[#allocation4 + $0x98] ss:$12 sps:$4 sm:$0xff]   ;;  %v3495_v33 = vld [vmem:[#allocation4 + $0x34] ss:$12 sps:$4 sm:$0xff]  }
 0x5f1   :  { %3605 = vpow2.f32 %v3003_v28  ;;  %v2132_v26 = vadd.f32 %v2076_v41, %v266_v29  ;;  %v3005_v3 = vmul.f32 -1.442695, %v2145_v38  ;;  %v2160_v23 = vadd.f32 %v4200_v35, %v2118_v31  ;;  %v3484_v28 = vld [vmem:[#allocation4 + $0x80] ss:$12 sps:$4 sm:$0xff]   ;;  %v3487_v29 = vld [vmem:[#allocation4 + $0x64] ss:$12 sps:$4 sm:$0xff]  }
 0x5f2   :  { %v3316_v30 = vpop.f32.mrf.mxu1  ;;  %v2078_v6 = vpop.f32.mrf.mxu0  ;;  %v3488_v41 = vld [vmem:[#allocation4 + $0x68] ss:$12 sps:$4 sm:$0xff]   ;;  %v3491_v31 = vld [vmem:[#allocation4 + $0x4c] ss:$12 sps:$4 sm:$0xff]  }
 0x5f3   :  { %v3004_v5 = vmul.f32 -1.442695, %v2132_v26  ;;  %v2146_v24 = vadd.f32 %v2078_v6, %v267_v34  ;;  %v3489_v26 = vld [vmem:[#allocation4 + $0x48] ss:$12 sps:$4 sm:$0xff]   ;;  %v3492_v30 = vld [vmem:[#allocation4 + $0x50] ss:$12 sps:$4 sm:$0xff]  }
 0x5f4   :  { %v3496_v6 = vld [vmem:[#allocation4 + $0x38] ss:$12 sps:$4 sm:$0xff]   ;;  %v3499_v34 = vld [vmem:[#allocation4 + $0x1c] ss:$12 sps:$4 sm:$0xff]  }
 0x5f5   :  { %3607 = vpow2.f32 %v3004_v5  ;;  %v3006_v25 = vmul.f32 -1.442695, %v2146_v24  ;;  %v3493_v5 = vld [vmem:[#allocation4 + $0x30] ss:$12 sps:$4 sm:$0xff]   ;;  %v3497_v38 = vld [vmem:[#allocation4 + $0x18] ss:$12 sps:$4 sm:$0xff]  }
 0x5f6   :  { %3609 = vpow2.f32 %v3005_v3  ;;  %v3500_v24 = vld [vmem:[#allocation4 + $0x20] ss:$12 sps:$4 sm:$0xff]   ;;  %v3503_v3 = vld [vmem:[#allocation4 + $0x4] ss:$12 sps:$4 sm:$0xff]  }
 0x5f7   :  { %3611 = vpow2.f32 %v3006_v25  ;;  %v3501_v25 = vld [vmem:[#allocation4] ss:$12 sps:$4 sm:$0xff]  }
 0x5fe   :  { %v3606_v4 = vpop.eup %3605 }
 0x5ff   :  { %v2139_v7 = vadd.f32 1.0, %v3606_v4  ;;  %v3504_v4 = vld [vmem:[#allocation4 + $0x8] ss:$12 sps:$4 sm:$0xff]  }
 0x601   :  { %3613 = vrcp.f32 %v2139_v7  ;;  %v123_v7 = vpop.permute.xlu0 %122 }
 0x602   :  { %v3608_v21 = vpop.eup %3607 }
 0x603   :  { %v2140_v8 = vadd.f32 1.0, %v3608_v21  ;;  %v3610_v10 = vpop.eup %3609  ;;  %v204_v21 = vmul.f32 %v3894_v57, %v123_v7 }
 0x604   :  { %v3612_v13 = vpop.eup %3611  ;;  %v2153_v11 = vadd.f32 1.0, %v3610_v10 }
 0x605   :  { %3615 = vrcp.f32 %v2140_v8  ;;  %v2154_v44 = vadd.f32 1.0, %v3612_v13  ;;  %v128_v8 = vpop.permute.xlu1 %127  ;;  %v269_v13 = vadd.f32 %v3900_v62, %v204_v21 }
 0x606   :  { %3617 = vrcp.f32 %v2153_v11  ;;  %v207_v10 = vmul.f32 %v3894_v57, %v128_v8 }
 0x607   :  { %3619 = vrcp.f32 %v2154_v44 }
 0x60e   :  { %v3614_v37 = vpop.eup %3613 }
 0x60f   :  { %v2161_v54 = vmul.f32 %v3614_v37, %v2159_v17 }
 0x611   :  { %v2163_v18 = vadd.f32 %v2161_v54, %v265_v47  ;;  %v205_v47 = vmul.f32 %v3903_v12, %v123_v7  ;;  %v208_v54 = vmul.f32 %v3903_v12, %v128_v8 }
 0x612   :  { %v3616_v22 = vpop.eup %3615 }
 0x613   :  { %3621 = vtanh.f32 %v2163_v18  ;;  %v2162_v52 = vmul.f32 %v3616_v22, %v2160_v23  ;;  %v3618_v39 = vpop.eup %3617 }
 0x614   :  { %v3620_v40 = vpop.eup %3619  ;;  %v2167_v43 = vsub.f32 1.0, %v3618_v39  ;;  %v2171_v56 = vmul.f32 %v3618_v39, %v4156_v19  ;;  %v3476_v19 = vld [vmem:[#allocation4 + $0xb0] ss:$12 sps:$4 sm:$0xff]  }
 0x615   :  { %v2164_v36 = vadd.f32 %v2162_v52, %v268_v51  ;;  %v2168_v45 = vsub.f32 1.0, %v3620_v40  ;;  %v2172_v63 = vmul.f32 %v3620_v40, %v4158_v58  ;;  %v3479_v58 = vld [vmem:[#allocation4 + $0x94] ss:$12 sps:$4 sm:$0xff]   ;;  %v270_v52 = vadd.f32 %v3907_v27, %v205_v47 }
 0x616   :  { %v273_v40 = vadd.f32 %v3907_v27, %v208_v54 }
 0x617   :  { %3623 = vtanh.f32 %v2164_v36 }
 0x620   :  { %v3622_v42 = vpop.eup %3621 }
 0x621   :  { %v2169_v46 = vmul.f32 %v3622_v42, %v2167_v43 }
 0x623   :  { %v4209_v2 = vadd.f32 %v2171_v56, %v2169_v46 }
 0x624   :  { %v3624_v48 = vpop.eup %3623 }
 0x625   :  { %v2170_v49 = vmul.f32 %v3624_v48, %v2168_v45 }
 0x627   :  { %v4211_v15 = vadd.f32 %v2172_v63, %v2170_v49 }
 0x629   :  { %v2175_v16 = vpack.c.bf16 %v4211_v15, %v4209_v2 }
 0x62b   :  { %3114 = vst [vmem:[#allocation7 + $0x28] sm:$0xff] %v2175_v16   ;;  %2379 = vmatmul.mubr.bf16.vlgmr.msra.gmra.mxu0 %v2175_v16  ;;  %3334 = vmatmul.mubr.bf16.vlgmr.msra.gmra.mxu1 %v2175_v16 }
 0x62c   :  { %2686 = vmatprep.mubr.bf16.mxu0 %v3714_v1  ;;  %3353 = vmatprep.mubr.msk.bf16.mxu1 %vm3715_vm0, %v3713_v0  ;;  %v3481_v1 = vld [vmem:[#allocation4 + $0x78] ss:$12 sps:$4 sm:$0xff]  }
 0x62d   :  { %2655 = vmatpush1.bf16.msra.mxu0 %v3473_v32  ;;  %3338 = vmatpush3.bf16.msra.mxu1 %v3476_v19  ;;  %v206_v32 = vmul.f32 %v3913_v50, %v123_v7 }
 0x62e   :  { %3339 = vmatprep.subr.bf16.mxu1 %v3713_v0  ;;  %2656 = vmatprep.subr.bf16.mxu0 %v3479_v58 }
 0x631   :  { %2657 = vmatpush1.bf16.msra.mxu0 %v3477_v9  ;;  %3340 = vmatpush3.bf16.msra.mxu1 %v3480_v59 }
 0x632   :  { %3341 = vmatprep.subr.bf16.mxu1 %v3713_v0  ;;  %2658 = vmatprep.subr.bf16.mxu0 %v3483_v60  ;;  %v271_v60 = vadd.f32 %v3920_v61, %v206_v32 }
 0x635   :  { %2659 = vmatpush1.bf16.msra.mxu0 %v3481_v1  ;;  %3342 = vmatpush3.bf16.msra.mxu1 %v3484_v28  ;;  %v209_v1 = vmul.f32 %v3913_v50, %v128_v8 }
 0x636   :  { %3343 = vmatprep.subr.bf16.mxu1 %v3713_v0  ;;  %2660 = vmatprep.subr.bf16.mxu0 %v3487_v29 }
 0x639   :  { %2661 = vmatpush1.bf16.msra.mxu0 %v3485_v20  ;;  %3344 = vmatpush3.bf16.msra.mxu1 %v3488_v41 }
 0x63a   :  { %2662 = vmatprep.subr.bf16.mxu0 %v3491_v31  ;;  %3345 = vmatprep.subr.bf16.mxu1 %v3713_v0  ;;  %v274_v31 = vadd.f32 %v3920_v61, %v209_v1 }
 0x63d   :  { %2663 = vmatpush1.bf16.msra.mxu0 %v3489_v26  ;;  %3346 = vmatpush3.bf16.msra.mxu1 %v3492_v30 }
 0x63e   :  { %2664 = vmatprep.subr.bf16.mxu0 %v3495_v33  ;;  %3347 = vmatprep.subr.bf16.mxu1 %v3713_v0 }
 0x641   :  { %2665 = vmatpush1.bf16.msra.mxu0 %v3493_v5  ;;  %3348 = vmatpush3.bf16.msra.mxu1 %v3496_v6 }
 0x642   :  { %2666 = vmatprep.subr.bf16.mxu0 %v3499_v34  ;;  %3349 = vmatprep.subr.bf16.mxu1 %v3713_v0 }
 0x645   :  { %2667 = vmatpush1.bf16.msra.mxu0 %v3497_v38  ;;  %3350 = vmatpush3.bf16.msra.mxu1 %v3500_v24 }
 0x646   :  { %2668 = vmatprep.subr.bf16.mxu0 %v3503_v3  ;;  %3351 = vmatprep.subr.bf16.mxu1 %v3713_v0  ;;  %v272_v0 = vadd.f32 %v3900_v62, %v207_v10 }
 0x649   :  { %2669 = vmatpush1.bf16.msra.mxu0 %v3501_v25  ;;  %3352 = vmatpush3.bf16.msra.mxu1 %v3504_v4 }
 0x6eb   :  { %v2380_v14 = vpop.f32.mrf.mxu0  ;;  %v2423_v17 = vpop.f32.mrf.mxu1 }
 0x6ec   :  { %v2439_v11 = vadd.f32 %v2380_v14, %v269_v13  ;;  %v2467_v19 = vadd.f32 %v4200_v35, %v2423_v17  ;;  %v133_v13 = vpop.permute.xlu0 %132  ;;  %v138_v17 = vpop.permute.xlu1 %137 }
 0x6ed   :  { %v2382_v37 = vpop.f32.mrf.mxu0  ;;  %v3335_v44 = vpop.f32.mrf.mxu1  ;;  %v210_v14 = vmul.f32 %v3894_v57, %v133_v13 }
 0x6ee   :  { %v3033_v53 = vmul.f32 -1.442695, %v2439_v11  ;;  %v2453_v42 = vadd.f32 %v2382_v37, %v270_v52  ;;  %v213_v11 = vmul.f32 %v3894_v57, %v138_v17 }
 0x6ef   :  { %v2384_v18 = vpop.f32.mrf.mxu0  ;;  %v2426_v23 = vpop.f32.mrf.mxu1 }
 0x6f0   :  { %3625 = vpow2.f32 %v3033_v53  ;;  %v2440_v22 = vadd.f32 %v2384_v18, %v272_v0  ;;  %v3035_v45 = vmul.f32 -1.442695, %v2453_v42  ;;  %v2468_v20 = vadd.f32 %v4200_v35, %v2426_v23 }
 0x6f1   :  { %v3336_v51 = vpop.f32.mrf.mxu1  ;;  %v2386_v39 = vpop.f32.mrf.mxu0  ;;  %v211_v0 = vmul.f32 %v3903_v12, %v133_v13  ;;  %v278_v18 = vadd.f32 %v3900_v62, %v213_v11  ;;  %v214_v23 = vmul.f32 %v3903_v12, %v138_v17 }
 0x6f2   :  { %v3034_v36 = vmul.f32 -1.442695, %v2440_v22  ;;  %v2454_v43 = vadd.f32 %v2386_v39, %v273_v40 }
 0x6f3   :  { %v276_v57 = vadd.f32 %v3907_v27, %v211_v0  ;;  %v279_v42 = vadd.f32 %v3907_v27, %v214_v23 }
 0x6f4   :  { %3627 = vpow2.f32 %v3034_v36  ;;  %v3036_v46 = vmul.f32 -1.442695, %v2454_v43 }
 0x6f5   :  { %3629 = vpow2.f32 %v3035_v45 }
 0x6f6   :  { %3631 = vpow2.f32 %v3036_v46 }
 0x6fd   :  { %v3626_v48 = vpop.eup %3625 }
 0x6fe   :  { %v2447_v49 = vadd.f32 1.0, %v3626_v48 }
 0x700   :  { %3633 = vrcp.f32 %v2447_v49 }
 0x701   :  { %v3628_v56 = vpop.eup %3627 }
 0x702   :  { %v2448_v63 = vadd.f32 1.0, %v3628_v56  ;;  %v3630_v16 = vpop.eup %3629 }
 0x703   :  { %v3632_v55 = vpop.eup %3631  ;;  %v2461_v58 = vadd.f32 1.0, %v3630_v16 }
 0x704   :  { %3635 = vrcp.f32 %v2448_v63  ;;  %v2462_v59 = vadd.f32 1.0, %v3632_v55  ;;  %v212_v55 = vmul.f32 %v3913_v50, %v133_v13 }
 0x705   :  { %3637 = vrcp.f32 %v2461_v58 }
 0x706   :  { %3639 = vrcp.f32 %v2462_v59  ;;  %v215_v59 = vmul.f32 %v3913_v50, %v138_v17 }
 0x70d   :  { %v3634_v9 = vpop.eup %3633 }
 0x70e   :  { %v2469_v28 = vmul.f32 %v3634_v9, %v2467_v19  ;;  %v277_v9 = vadd.f32 %v3920_v61, %v212_v55 }
 0x710   :  { %v2471_v29 = vadd.f32 %v2469_v28, %v271_v60 }
 0x711   :  { %v3636_v41 = vpop.eup %3635 }
 0x712   :  { %3641 = vtanh.f32 %v2471_v29  ;;  %v2470_v26 = vmul.f32 %v3636_v41, %v2468_v20  ;;  %v3638_v33 = vpop.eup %3637  ;;  %v280_v20 = vadd.f32 %v3920_v61, %v215_v59 }
 0x713   :  { %v3640_v5 = vpop.eup %3639  ;;  %v2475_v34 = vsub.f32 1.0, %v3638_v33  ;;  %v2479_v4 = vmul.f32 %v3638_v33, %v4209_v2  ;;  %v275_v2 = vadd.f32 %v3900_v62, %v210_v14 }
 0x714   :  { %v2472_v30 = vadd.f32 %v2470_v26, %v274_v31  ;;  %v2476_v38 = vsub.f32 1.0, %v3640_v5  ;;  %v2480_v7 = vmul.f32 %v3640_v5, %v4211_v15 }
 0x716   :  { %3643 = vtanh.f32 %v2472_v30 }
 0x71f   :  { %v3642_v6 = vpop.eup %3641 }
 0x720   :  { %v2477_v24 = vmul.f32 %v3642_v6, %v2475_v34 }
 0x722   :  { %v4241_v21 = vadd.f32 %v2479_v4, %v2477_v24 }
 0x723   :  { %v3644_v3 = vpop.eup %3643 }
 0x724   :  { %v2478_v25 = vmul.f32 %v3644_v3, %v2476_v38 }
 0x726   :  { %v4243_v8 = vadd.f32 %v2480_v7, %v2478_v25 }
 0x728   :  { %v2483_v10 = vpack.c.bf16 %v4243_v8, %v4241_v21 }
 0x72a   :  { %3119 = vst [vmem:[#allocation7 + $0x30] sm:$0xff] %v2483_v10   ;;  %2687 = vmatmul.mubr.bf16.vlgmr.msra.gmra.mxu0 %v2483_v10  ;;  %3354 = vmatmul.mubr.bf16.vlgmr.msra.gmra.mxu1 %v2483_v10 }
 0x7ea   :  { %v2688_v37 = vpop.f32.mrf.mxu0  ;;  %v2731_v15 = vpop.f32.mrf.mxu1 }
 0x7eb   :  { %v2747_v44 = vadd.f32 %v2688_v37, %v275_v2  ;;  %v2775_v32 = vadd.f32 %v4200_v35, %v2731_v15 }
 0x7ec   :  { %v2690_v47 = vpop.f32.mrf.mxu0  ;;  %v3355_v53 = vpop.f32.mrf.mxu1 }
 0x7ed   :  { %v3063_v54 = vmul.f32 -1.442695, %v2747_v44  ;;  %v2761_v43 = vadd.f32 %v2690_v47, %v276_v57 }
 0x7ee   :  { %v2692_v22 = vpop.f32.mrf.mxu0  ;;  %v2734_v51 = vpop.f32.mrf.mxu1 }
 0x7ef   :  { %3645 = vpow2.f32 %v3063_v54  ;;  %v2748_v52 = vadd.f32 %v2692_v22, %v278_v18  ;;  %v3065_v46 = vmul.f32 -1.442695, %v2761_v43  ;;  %v2776_v28 = vadd.f32 %v4200_v35, %v2734_v51 }
 0x7f0   :  { %v3356_v36 = vpop.f32.mrf.mxu1  ;;  %v2694_v40 = vpop.f32.mrf.mxu0 }
 0x7f1   :  { %v3064_v39 = vmul.f32 -1.442695, %v2748_v52  ;;  %v2762_v45 = vadd.f32 %v2694_v40, %v279_v42 }
 0x7f3   :  { %3647 = vpow2.f32 %v3064_v39  ;;  %v3066_v48 = vmul.f32 -1.442695, %v2762_v45 }
 0x7f4   :  { %3649 = vpow2.f32 %v3065_v46 }
 0x7f5   :  { %3651 = vpow2.f32 %v3066_v48 }
 0x7fc   :  { %v3646_v62 = vpop.eup %3645 }
 0x7fd   :  { %v2755_v12 = vadd.f32 1.0, %v3646_v62 }
 0x7ff   :  { %3653 = vrcp.f32 %v2755_v12 }
 0x800   :  { %v3648_v49 = vpop.eup %3647 }
 0x801   :  { %v2756_v56 = vadd.f32 1.0, %v3648_v49  ;;  %v3650_v63 = vpop.eup %3649 }
 0x802   :  { %v3652_v16 = vpop.eup %3651  ;;  %v2769_v27 = vadd.f32 1.0, %v3650_v63 }
 0x803   :  { %3655 = vrcp.f32 %v2756_v56  ;;  %v2770_v58 = vadd.f32 1.0, %v3652_v16 }
 0x804   :  { %3657 = vrcp.f32 %v2769_v27 }
 0x805   :  { %3659 = vrcp.f32 %v2770_v58 }
 0x80c   :  { %v3654_v19 = vpop.eup %3653 }
 0x80d   :  { %v2777_v60 = vmul.f32 %v3654_v19, %v2775_v32 }
 0x80f   :  { %v2779_v1 = vadd.f32 %v2777_v60, %v277_v9 }
 0x810   :  { %v3656_v29 = vpop.eup %3655 }
 0x811   :  { %3661 = vtanh.f32 %v2779_v1  ;;  %v2778_v41 = vmul.f32 %v3656_v29, %v2776_v28  ;;  %v3658_v26 = vpop.eup %3657 }
 0x812   :  { %v3660_v30 = vpop.eup %3659  ;;  %v2783_v5 = vsub.f32 1.0, %v3658_v26  ;;  %v2787_v38 = vmul.f32 %v3658_v26, %v4241_v21 }
 0x813   :  { %v2780_v31 = vadd.f32 %v2778_v41, %v280_v20  ;;  %v2784_v34 = vsub.f32 1.0, %v3660_v30  ;;  %v2788_v35 = vmul.f32 %v3660_v30, %v4243_v8 }
 0x815   :  { %3663 = vtanh.f32 %v2780_v31 }
 0x81e   :  { %v3662_v33 = vpop.eup %3661 }
 0x81f   :  { %v2785_v6 = vmul.f32 %v3662_v33, %v2783_v5 }
 0x821   :  { %v2789_v3 = vadd.f32 %v2787_v38, %v2785_v6 }
 0x822   :  { %v3664_v50 = vpop.eup %3663 }
 0x823   :  { %v2786_v24 = vmul.f32 %v3664_v50, %v2784_v34 }
 0x825   :  { %v2790_v61 = vadd.f32 %v2788_v35, %v2786_v24 }
 0x827   :  { %v3123_v25 = vpack.c.bf16 %v2790_v61, %v2789_v3 }
 0x829   :  { %3124 = vst [vmem:[#allocation7 + $0x38] sm:$0xff] %v3123_v25  }
 0x82a   :  { %3697 = shalt.err (!%p3694_p9)
}
 0x82b   :  { %s3718_s12 = smov 64   ;;  %s3719_s13 = smov 4  }
 0x82c   :  { %2815 = dma.vmem_to_hbm [thread:$0]  %s2810_s10, 1024, %s4271_s5, [#allocation6], %s3718_s12, %s3718_s12, %s3719_s13  }
 0x82d   :  { %3708 = dma.done.wait [#allocation6], 1024  }
 0x82e   :  { %3709 = vsyncadd [#allocation6], 4294966272 }
 0x82f   :  { %2819 = vsyncpa [#allocation5], 1 }
 0x830   :  { %2820 = vsyncpa [#allocation6], 1 }

</bundles_post_ra>
